<compile_context>
chip_gen: v7x
topology: tpu7x:2x2x1
jax: 0.10.0
libtpu: 0.0.40
codegen_flags: <defaults>
</compile_context>

<pallas_src>
import functools

import numpy as np

import jax
import jax.numpy as jnp
from jax.experimental import pallas as pl
from jax.experimental.pallas import tpu as pltpu


def _sigmoid(z):
    # 1 / (1 + exp(-z)) with the reciprocal pushed to the EUP slot.
    return pl.reciprocal(1.0 + jnp.exp(-z), approx=True)


def cbam_kernel(x_ref, w1t_ref, w2t_ref, mask_ref, cw_ref, cb_ref, o_ref, *, H, W):
    HW = H * W
    x = x_ref[...].astype(jnp.float32)                   # (bt, C, HW)
    C = x.shape[1]
    inv_hw = 1.0 / HW
    inv_c = 1.0 / C

    # ---- Channel attention: global max/avg pool -> shared MLP (run twice) ----
    maxv = jnp.max(x, axis=2)                            # (bt, C)
    avgv = jnp.sum(x, axis=2) * inv_hw                   # (bt, C)

    def se(v):
        h = jnp.maximum(
            jnp.dot(v, w1t_ref[...], preferred_element_type=jnp.float32), 0.0)
        return jnp.dot(h, w2t_ref[...], preferred_element_type=jnp.float32)

    ca = _sigmoid(se(maxv) + se(avgv))                   # (bt, C)
    out1 = x * ca[:, :, None]                            # (bt, C, HW)

    # ---- Spatial attention: channel max/mean -> 3x3 conv -> sigmoid ----
    smax = jnp.max(out1, axis=1)                         # (bt, HW)
    smean = jnp.sum(out1, axis=1) * inv_c                # (bt, HW)

    acc = jnp.full(smax.shape, cb_ref[0], dtype=jnp.float32)
    for k in range(9):                                   # unrolled 3x3 cross-correlation
        oy = k // 3 - 1
        ox = k % 3 - 1
        shift = (-(oy * W + ox)) % HW                    # flat-index tap offset
        tmax = pltpu.roll(smax, shift=shift, axis=1) if shift else smax
        tavg = pltpu.roll(smean, shift=shift, axis=1) if shift else smean
        m = mask_ref[k]                                  # (1, HW) edge zero-pad mask
        acc = acc + m * (cw_ref[k] * tmax + cw_ref[9 + k] * tavg)

    sa = _sigmoid(acc)                                   # (bt, HW)

    # ---- Gate + residual ----
    o_ref[...] = (out1 * sa[:, None, :] + x).astype(o_ref.dtype)


def _vmem_capacity_bytes(default=64 << 20):
    try:
        info = pltpu.get_tpu_info()
        return int(getattr(info, "vmem_capacity_bytes", default))
    except Exception:
        return default


def _edge_masks(H, W):
    """(9, 1, H*W) float masks implementing SAME zero-padding for a 3x3 conv."""
    yy, xx = np.meshgrid(np.arange(H), np.arange(W), indexing="ij")
    masks = []
    for dy in range(3):
        for dx in range(3):
            oy, ox = dy - 1, dx - 1
            m = ((yy + oy >= 0) & (yy + oy < H) &
                 (xx + ox >= 0) & (xx + ox < W))
            masks.append(m.reshape(1, H * W))
    return jnp.asarray(np.stack(masks, axis=0).astype(np.float32))


def cbam_block(x, w1, w2, conv_w, conv_b, *, target_steps=4):
    B, C, H, W = x.shape
    HW = H * W
    Cr = w1.shape[0]

    xf = x.reshape(B, C, HW)                             # lane-dense view
    w1t = w1.T                                           # (C, Cr)
    w2t = w2.T                                           # (Cr, C)
    mask = _edge_masks(H, W)                             # (9, 1, HW)

    # ---- Generation-aware block sizing ----
    vmem_cap = _vmem_capacity_bytes()
    block_budget = (8 << 20) if vmem_cap >= (128 << 20) else (4 << 20)

    # Budget in f32 terms (kernel intermediates are f32 even for bf16 I/O).
    elem_bytes = C * HW * max(x.dtype.itemsize, 4)
    bt_vmem = max(1, block_budget // elem_bytes)
    # Keep >= target_steps grid steps when B allows: pipelining + megacore.
    bt = max(1, min(bt_vmem, pl.cdiv(B, target_steps)))

    n_steps = pl.cdiv(B, bt)
    Bp = n_steps * bt
    if Bp != B:                                          # ragged batch: pad, slice later
        xf = jnp.pad(xf, ((0, Bp - B), (0, 0), (0, 0)))

    # Footprint ~ 2x in + 2x out (double-buffered) + ~3x f32 intermediates.
    vmem_limit = min(int(vmem_cap * 0.75), 8 * bt * elem_bytes + (8 << 20))
    vmem_limit = max(vmem_limit, 16 << 20)

    kernel = functools.partial(cbam_kernel, H=H, W=W)
    out = pl.pallas_call(
        kernel,
        out_shape=jax.ShapeDtypeStruct((Bp, C, HW), x.dtype),
        grid=(n_steps,),
        in_specs=[
            pl.BlockSpec((bt, C, HW), lambda b: (b, 0, 0)),          # x (lane-dense)
            pl.BlockSpec((C, Cr), lambda b: (0, 0)),                 # SE w1^T
            pl.BlockSpec((Cr, C), lambda b: (0, 0)),                 # SE w2^T
            pl.BlockSpec((9, 1, HW), lambda b: (0, 0, 0)),           # 3x3 edge masks
            pl.BlockSpec(memory_space=pltpu.MemorySpace.SMEM),       # conv weights (18,)
            pl.BlockSpec(memory_space=pltpu.MemorySpace.SMEM),       # conv bias (1,)
        ],
        out_specs=pl.BlockSpec((bt, C, HW), lambda b: (b, 0, 0)),
        compiler_params=pltpu.CompilerParams(
            dimension_semantics=("parallel",),                       # megacore sharding
            vmem_limit_bytes=int(vmem_limit)),
    )(xf, w1t, w2t, mask, conv_w, conv_b)

    if Bp != B:
        out = out[:B]
    return out.reshape(B, C, H, W)


def cbam_ref(x, w1, w2, conv_w, conv_b):
    """Pure-JAX reference matching the PyTorch CBAMBlock forward."""
    maxp = jnp.max(x, axis=(2, 3))                       # (B, C)
    avgp = jnp.mean(x, axis=(2, 3))                      # (B, C)

    def se(v):
        return jax.nn.relu(v @ w1.T) @ w2.T

    ca = jax.nn.sigmoid(se(maxp) + se(avgp))[:, :, None, None]
    out = x * ca
    smax = jnp.max(out, axis=1, keepdims=True)
    smean = jnp.mean(out, axis=1, keepdims=True)
    s = jnp.concatenate([smax, smean], axis=1)           # (B, 2, H, W)
    w = conv_w.reshape(1, 2, 3, 3)
    conv = jax.lax.conv_general_dilated(
        s, w, window_strides=(1, 1), padding="SAME",
        dimension_numbers=("NCHW", "OIHW", "NCHW"))
    sa = jax.nn.sigmoid(conv + conv_b.reshape(1, 1, 1, 1))
    return out * sa + x


if __name__ == "__main__":
    B, C, H, W = 2, 64, 16, 16
    reduction = 16
    Cr = C // reduction

    key = jax.random.PRNGKey(0)
    k_x, k_w1, k_w2, k_cw, k_cb = jax.random.split(key, 5)
    x = jax.random.normal(k_x, (B, C, H, W), jnp.float32)
    # Deterministic synthetic parameters (shapes from the module's __init__):
    w1 = jax.random.normal(k_w1, (Cr, C), jnp.float32) * 0.1      # Conv2d(C, C//r, 1, bias=False)
    w2 = jax.random.normal(k_w2, (C, Cr), jnp.float32) * 0.1      # Conv2d(C//r, C, 1, bias=False)
    conv_w = jax.random.normal(k_cw, (18,), jnp.float32) * 0.1    # Conv2d(2, 1, 3, pad=1) weight (1,2,3,3) flat
    conv_b = jax.random.normal(k_cb, (1,), jnp.float32) * 0.1     # its bias

    out = cbam_block(x, w1, w2, conv_w, conv_b)
    jax.block_until_ready(out)

    ref = cbam_ref(x, w1, w2, conv_w, conv_b)
    err = float(jnp.max(jnp.abs(out - ref)))
    # Slightly loose tolerance: sigmoids use the EUP approximate reciprocal.
    assert jnp.allclose(out, ref, atol=3e-3, rtol=3e-3), f"max abs err={err}"
    print("KERNEL_OK")
</pallas_src>

<mosaic_0001>
module attributes {stable_mosaic.version = 11 : i64} {
  func.func @cbam_kernel(%arg0: i32, %arg1: memref<1x64x256xf32, #tpu.memory_space<vmem>>, %arg2: memref<64x4xf32, #tpu.memory_space<vmem>>, %arg3: memref<4x64xf32, #tpu.memory_space<vmem>>, %arg4: memref<9x1x256xf32, #tpu.memory_space<vmem>>, %arg5: memref<18xf32, #tpu.memory_space<smem>>, %arg6: memref<1xf32, #tpu.memory_space<smem>>, %arg7: memref<1x64x256xf32, #tpu.memory_space<vmem>>) attributes {dimension_semantics = [#tpu.dimension_semantics<parallel>], iteration_bounds = array<i64: 2>, scalar_prefetch = 0 : i64, scratch_operands = 0 : i64, tpu.core_type = #tpu.core_type<tc>, window_params = [{transform_indices = @transform_0, window_bounds = array<i64: 1, 64, 256>}, {pipeline_mode = #tpu.pipeline_mode<synchronous>, transform_indices = @transform_1, window_bounds = array<i64: 64, 4>}, {pipeline_mode = #tpu.pipeline_mode<synchronous>, transform_indices = @transform_2, window_bounds = array<i64: 4, 64>}, {pipeline_mode = #tpu.pipeline_mode<synchronous>, transform_indices = @transform_3, window_bounds = array<i64: 9, 1, 256>}, {transform_indices = @transform_4, window_bounds = array<i64: 18>}, {transform_indices = @transform_5, window_bounds = array<i64: 1>}, {transform_indices = @transform_6, window_bounds = array<i64: 1, 64, 256>}]} {
    %c0 = arith.constant 0 : index
    %c0_0 = arith.constant 0 : index
    %c0_1 = arith.constant 0 : index
    %0 = vector.load %arg1[%c0, %c0_0, %c0_1] : memref<1x64x256xf32, #tpu.memory_space<vmem>>, vector<1x64x256xf32>
    %cst = arith.constant dense<0xFF800000> : vector<1x64xf32>
    %1 = vector.multi_reduction <maximumf>, %0, %cst [2] : vector<1x64x256xf32> to vector<1x64xf32>
    %cst_2 = arith.constant dense<0.000000e+00> : vector<1x64xf32>
    %2 = vector.multi_reduction <add>, %0, %cst_2 [2] : vector<1x64x256xf32> to vector<1x64xf32>
    %cst_3 = arith.constant 3.906250e-03 : f32
    %3 = vector.broadcast %cst_3 : f32 to vector<1x64xf32>
    %4 = arith.mulf %2, %3 : vector<1x64xf32>
    %c0_4 = arith.constant 0 : index
    %c0_5 = arith.constant 0 : index
    %5 = vector.load %arg2[%c0_4, %c0_5] : memref<64x4xf32, #tpu.memory_space<vmem>>, vector<64x4xf32>
    %cst_6 = arith.constant dense<0.000000e+00> : vector<1x4xf32>
    %6 = tpu.matmul %1, %5, %cst_6 {dimension_numbers = #tpu.dot_dimension_numbers<[1], [0], [0], [1], [0, 0, 1, 1], [], []>} : vector<1x64xf32>, vector<64x4xf32>, vector<1x4xf32> -> vector<1x4xf32>
    %cst_7 = arith.constant 0.000000e+00 : f32
    %7 = vector.broadcast %cst_7 : f32 to vector<1x4xf32>
    %8 = arith.maximumf %6, %7 : vector<1x4xf32>
    %c0_8 = arith.constant 0 : index
    %c0_9 = arith.constant 0 : index
    %9 = vector.load %arg3[%c0_8, %c0_9] : memref<4x64xf32, #tpu.memory_space<vmem>>, vector<4x64xf32>
    %cst_10 = arith.constant dense<0.000000e+00> : vector<1x64xf32>
    %10 = tpu.matmul %8, %9, %cst_10 {dimension_numbers = #tpu.dot_dimension_numbers<[1], [0], [0], [1], [0, 0, 1, 1], [], []>} : vector<1x4xf32>, vector<4x64xf32>, vector<1x64xf32> -> vector<1x64xf32>
    %c0_11 = arith.constant 0 : index
    %c0_12 = arith.constant 0 : index
    %11 = vector.load %arg2[%c0_11, %c0_12] : memref<64x4xf32, #tpu.memory_space<vmem>>, vector<64x4xf32>
    %cst_13 = arith.constant dense<0.000000e+00> : vector<1x4xf32>
    %12 = tpu.matmul %4, %11, %cst_13 {dimension_numbers = #tpu.dot_dimension_numbers<[1], [0], [0], [1], [0, 0, 1, 1], [], []>} : vector<1x64xf32>, vector<64x4xf32>, vector<1x4xf32> -> vector<1x4xf32>
    %cst_14 = arith.constant 0.000000e+00 : f32
    %13 = vector.broadcast %cst_14 : f32 to vector<1x4xf32>
    %14 = arith.maximumf %12, %13 : vector<1x4xf32>
    %c0_15 = arith.constant 0 : index
    %c0_16 = arith.constant 0 : index
    %15 = vector.load %arg3[%c0_15, %c0_16] : memref<4x64xf32, #tpu.memory_space<vmem>>, vector<4x64xf32>
    %cst_17 = arith.constant dense<0.000000e+00> : vector<1x64xf32>
    %16 = tpu.matmul %14, %15, %cst_17 {dimension_numbers = #tpu.dot_dimension_numbers<[1], [0], [0], [1], [0, 0, 1, 1], [], []>} : vector<1x4xf32>, vector<4x64xf32>, vector<1x64xf32> -> vector<1x64xf32>
    %17 = arith.addf %10, %16 : vector<1x64xf32>
    %cst_18 = arith.constant 0.000000e+00 : f32
    %18 = vector.broadcast %cst_18 : f32 to vector<1x64xf32>
    %19 = arith.subf %18, %17 : vector<1x64xf32>
    %20 = math.exp %19 : vector<1x64xf32>
    %cst_19 = arith.constant 1.000000e+00 : f32
    %21 = vector.broadcast %cst_19 : f32 to vector<1x64xf32>
    %22 = arith.addf %21, %20 : vector<1x64xf32>
    %23 = tpu.reciprocal %22 {approx = true} : vector<1x64xf32> -> vector<1x64xf32>
    %24 = vector.shape_cast %23 : vector<1x64xf32> to vector<1x64x1xf32>
    %25 = vector.broadcast %24 : vector<1x64x1xf32> to vector<1x64x256xf32>
    %26 = arith.mulf %0, %25 : vector<1x64x256xf32>
    %cst_20 = arith.constant dense<0xFF800000> : vector<1x256xf32>
    %27 = vector.multi_reduction <maximumf>, %26, %cst_20 [1] : vector<1x64x256xf32> to vector<1x256xf32>
    %cst_21 = arith.constant dense<0.000000e+00> : vector<1x256xf32>
    %28 = vector.multi_reduction <add>, %26, %cst_21 [1] : vector<1x64x256xf32> to vector<1x256xf32>
    %cst_22 = arith.constant 1.562500e-02 : f32
    %29 = vector.broadcast %cst_22 : f32 to vector<1x256xf32>
    %30 = arith.mulf %28, %29 : vector<1x256xf32>
    %c0_23 = arith.constant 0 : index
    %31 = memref.load %arg6[%c0_23] : memref<1xf32, #tpu.memory_space<smem>>
    %32 = vector.broadcast %31 : f32 to vector<1x256xf32>
    %c17_i32 = arith.constant 17 : i32
    %33 = tpu.dynamic_rotate %27 by %c17_i32 dim 1 : vector<1x256xf32>, i32 -> vector<1x256xf32>
    %c17_i32_24 = arith.constant 17 : i32
    %34 = tpu.dynamic_rotate %30 by %c17_i32_24 dim 1 : vector<1x256xf32>, i32 -> vector<1x256xf32>
    %c0_25 = arith.constant 0 : index
    %c0_26 = arith.constant 0 : index
    %c0_27 = arith.constant 0 : index
    %35 = vector.load %arg4[%c0_25, %c0_26, %c0_27] : memref<9x1x256xf32, #tpu.memory_space<vmem>>, vector<1x1x256xf32>
    %36 = vector.shape_cast %35 : vector<1x1x256xf32> to vector<1x256xf32>
    %c0_28 = arith.constant 0 : index
    %37 = memref.load %arg5[%c0_28] : memref<18xf32, #tpu.memory_space<smem>>
    %38 = vector.broadcast %37 : f32 to vector<1x256xf32>
    %39 = arith.mulf %38, %33 : vector<1x256xf32>
    %c9 = arith.constant 9 : index
    %40 = memref.load %arg5[%c9] : memref<18xf32, #tpu.memory_space<smem>>
    %41 = vector.broadcast %40 : f32 to vector<1x256xf32>
    %42 = arith.mulf %41, %34 : vector<1x256xf32>
    %43 = arith.addf %39, %42 : vector<1x256xf32>
    %44 = arith.mulf %36, %43 : vector<1x256xf32>
    %45 = arith.addf %32, %44 : vector<1x256xf32>
    %c16_i32 = arith.constant 16 : i32
    %46 = tpu.dynamic_rotate %27 by %c16_i32 dim 1 : vector<1x256xf32>, i32 -> vector<1x256xf32>
    %c16_i32_29 = arith.constant 16 : i32
    %47 = tpu.dynamic_rotate %30 by %c16_i32_29 dim 1 : vector<1x256xf32>, i32 -> vector<1x256xf32>
    %c1 = arith.constant 1 : index
    %c0_30 = arith.constant 0 : index
    %c0_31 = arith.constant 0 : index
    %48 = vector.load %arg4[%c1, %c0_30, %c0_31] : memref<9x1x256xf32, #tpu.memory_space<vmem>>, vector<1x1x256xf32>
    %49 = vector.shape_cast %48 : vector<1x1x256xf32> to vector<1x256xf32>
    %c1_32 = arith.constant 1 : index
    %50 = memref.load %arg5[%c1_32] : memref<18xf32, #tpu.memory_space<smem>>
    %51 = vector.broadcast %50 : f32 to vector<1x256xf32>
    %52 = arith.mulf %51, %46 : vector<1x256xf32>
    %c10 = arith.constant 10 : index
    %53 = memref.load %arg5[%c10] : memref<18xf32, #tpu.memory_space<smem>>
    %54 = vector.broadcast %53 : f32 to vector<1x256xf32>
    %55 = arith.mulf %54, %47 : vector<1x256xf32>
    %56 = arith.addf %52, %55 : vector<1x256xf32>
    %57 = arith.mulf %49, %56 : vector<1x256xf32>
    %58 = arith.addf %45, %57 : vector<1x256xf32>
    %c15_i32 = arith.constant 15 : i32
    %59 = tpu.dynamic_rotate %27 by %c15_i32 dim 1 : vector<1x256xf32>, i32 -> vector<1x256xf32>
    %c15_i32_33 = arith.constant 15 : i32
    %60 = tpu.dynamic_rotate %30 by %c15_i32_33 dim 1 : vector<1x256xf32>, i32 -> vector<1x256xf32>
    %c2 = arith.constant 2 : index
    %c0_34 = arith.constant 0 : index
    %c0_35 = arith.constant 0 : index
    %61 = vector.load %arg4[%c2, %c0_34, %c0_35] : memref<9x1x256xf32, #tpu.memory_space<vmem>>, vector<1x1x256xf32>
    %62 = vector.shape_cast %61 : vector<1x1x256xf32> to vector<1x256xf32>
    %c2_36 = arith.constant 2 : index
    %63 = memref.load %arg5[%c2_36] : memref<18xf32, #tpu.memory_space<smem>>
    %64 = vector.broadcast %63 : f32 to vector<1x256xf32>
    %65 = arith.mulf %64, %59 : vector<1x256xf32>
    %c11 = arith.constant 11 : index
    %66 = memref.load %arg5[%c11] : memref<18xf32, #tpu.memory_space<smem>>
    %67 = vector.broadcast %66 : f32 to vector<1x256xf32>
    %68 = arith.mulf %67, %60 : vector<1x256xf32>
    %69 = arith.addf %65, %68 : vector<1x256xf32>
    %70 = arith.mulf %62, %69 : vector<1x256xf32>
    %71 = arith.addf %58, %70 : vector<1x256xf32>
    %c1_i32 = arith.constant 1 : i32
    %72 = tpu.dynamic_rotate %27 by %c1_i32 dim 1 : vector<1x256xf32>, i32 -> vector<1x256xf32>
    %c1_i32_37 = arith.constant 1 : i32
    %73 = tpu.dynamic_rotate %30 by %c1_i32_37 dim 1 : vector<1x256xf32>, i32 -> vector<1x256xf32>
    %c3 = arith.constant 3 : index
    %c0_38 = arith.constant 0 : index
    %c0_39 = arith.constant 0 : index
    %74 = vector.load %arg4[%c3, %c0_38, %c0_39] : memref<9x1x256xf32, #tpu.memory_space<vmem>>, vector<1x1x256xf32>
    %75 = vector.shape_cast %74 : vector<1x1x256xf32> to vector<1x256xf32>
    %c3_40 = arith.constant 3 : index
    %76 = memref.load %arg5[%c3_40] : memref<18xf32, #tpu.memory_space<smem>>
    %77 = vector.broadcast %76 : f32 to vector<1x256xf32>
    %78 = arith.mulf %77, %72 : vector<1x256xf32>
    %c12 = arith.constant 12 : index
    %79 = memref.load %arg5[%c12] : memref<18xf32, #tpu.memory_space<smem>>
    %80 = vector.broadcast %79 : f32 to vector<1x256xf32>
    %81 = arith.mulf %80, %73 : vector<1x256xf32>
    %82 = arith.addf %78, %81 : vector<1x256xf32>
    %83 = arith.mulf %75, %82 : vector<1x256xf32>
    %84 = arith.addf %71, %83 : vector<1x256xf32>
    %c4 = arith.constant 4 : index
    %c0_41 = arith.constant 0 : index
    %c0_42 = arith.constant 0 : index
    %85 = vector.load %arg4[%c4, %c0_41, %c0_42] : memref<9x1x256xf32, #tpu.memory_space<vmem>>, vector<1x1x256xf32>
    %86 = vector.shape_cast %85 : vector<1x1x256xf32> to vector<1x256xf32>
    %c4_43 = arith.constant 4 : index
    %87 = memref.load %arg5[%c4_43] : memref<18xf32, #tpu.memory_space<smem>>
    %88 = vector.broadcast %87 : f32 to vector<1x256xf32>
    %89 = arith.mulf %88, %27 : vector<1x256xf32>
    %c13 = arith.constant 13 : index
    %90 = memref.load %arg5[%c13] : memref<18xf32, #tpu.memory_space<smem>>
    %91 = vector.broadcast %90 : f32 to vector<1x256xf32>
    %92 = arith.mulf %91, %30 : vector<1x256xf32>
    %93 = arith.addf %89, %92 : vector<1x256xf32>
    %94 = arith.mulf %86, %93 : vector<1x256xf32>
    %95 = arith.addf %84, %94 : vector<1x256xf32>
    %c255_i32 = arith.constant 255 : i32
    %96 = tpu.dynamic_rotate %27 by %c255_i32 dim 1 : vector<1x256xf32>, i32 -> vector<1x256xf32>
    %c255_i32_44 = arith.constant 255 : i32
    %97 = tpu.dynamic_rotate %30 by %c255_i32_44 dim 1 : vector<1x256xf32>, i32 -> vector<1x256xf32>
    %c5 = arith.constant 5 : index
    %c0_45 = arith.constant 0 : index
    %c0_46 = arith.constant 0 : index
    %98 = vector.load %arg4[%c5, %c0_45, %c0_46] : memref<9x1x256xf32, #tpu.memory_space<vmem>>, vector<1x1x256xf32>
    %99 = vector.shape_cast %98 : vector<1x1x256xf32> to vector<1x256xf32>
    %c5_47 = arith.constant 5 : index
    %100 = memref.load %arg5[%c5_47] : memref<18xf32, #tpu.memory_space<smem>>
    %101 = vector.broadcast %100 : f32 to vector<1x256xf32>
    %102 = arith.mulf %101, %96 : vector<1x256xf32>
    %c14 = arith.constant 14 : index
    %103 = memref.load %arg5[%c14] : memref<18xf32, #tpu.memory_space<smem>>
    %104 = vector.broadcast %103 : f32 to vector<1x256xf32>
    %105 = arith.mulf %104, %97 : vector<1x256xf32>
    %106 = arith.addf %102, %105 : vector<1x256xf32>
    %107 = arith.mulf %99, %106 : vector<1x256xf32>
    %108 = arith.addf %95, %107 : vector<1x256xf32>
    %c241_i32 = arith.constant 241 : i32
    %109 = tpu.dynamic_rotate %27 by %c241_i32 dim 1 : vector<1x256xf32>, i32 -> vector<1x256xf32>
    %c241_i32_48 = arith.constant 241 : i32
    %110 = tpu.dynamic_rotate %30 by %c241_i32_48 dim 1 : vector<1x256xf32>, i32 -> vector<1x256xf32>
    %c6 = arith.constant 6 : index
    %c0_49 = arith.constant 0 : index
    %c0_50 = arith.constant 0 : index
    %111 = vector.load %arg4[%c6, %c0_49, %c0_50] : memref<9x1x256xf32, #tpu.memory_space<vmem>>, vector<1x1x256xf32>
    %112 = vector.shape_cast %111 : vector<1x1x256xf32> to vector<1x256xf32>
    %c6_51 = arith.constant 6 : index
    %113 = memref.load %arg5[%c6_51] : memref<18xf32, #tpu.memory_space<smem>>
    %114 = vector.broadcast %113 : f32 to vector<1x256xf32>
    %115 = arith.mulf %114, %109 : vector<1x256xf32>
    %c15 = arith.constant 15 : index
    %116 = memref.load %arg5[%c15] : memref<18xf32, #tpu.memory_space<smem>>
    %117 = vector.broadcast %116 : f32 to vector<1x256xf32>
    %118 = arith.mulf %117, %110 : vector<1x256xf32>
    %119 = arith.addf %115, %118 : vector<1x256xf32>
    %120 = arith.mulf %112, %119 : vector<1x256xf32>
    %121 = arith.addf %108, %120 : vector<1x256xf32>
    %c240_i32 = arith.constant 240 : i32
    %122 = tpu.dynamic_rotate %27 by %c240_i32 dim 1 : vector<1x256xf32>, i32 -> vector<1x256xf32>
    %c240_i32_52 = arith.constant 240 : i32
    %123 = tpu.dynamic_rotate %30 by %c240_i32_52 dim 1 : vector<1x256xf32>, i32 -> vector<1x256xf32>
    %c7 = arith.constant 7 : index
    %c0_53 = arith.constant 0 : index
    %c0_54 = arith.constant 0 : index
    %124 = vector.load %arg4[%c7, %c0_53, %c0_54] : memref<9x1x256xf32, #tpu.memory_space<vmem>>, vector<1x1x256xf32>
    %125 = vector.shape_cast %124 : vector<1x1x256xf32> to vector<1x256xf32>
    %c7_55 = arith.constant 7 : index
    %126 = memref.load %arg5[%c7_55] : memref<18xf32, #tpu.memory_space<smem>>
    %127 = vector.broadcast %126 : f32 to vector<1x256xf32>
    %128 = arith.mulf %127, %122 : vector<1x256xf32>
    %c16 = arith.constant 16 : index
    %129 = memref.load %arg5[%c16] : memref<18xf32, #tpu.memory_space<smem>>
    %130 = vector.broadcast %129 : f32 to vector<1x256xf32>
    %131 = arith.mulf %130, %123 : vector<1x256xf32>
    %132 = arith.addf %128, %131 : vector<1x256xf32>
    %133 = arith.mulf %125, %132 : vector<1x256xf32>
    %134 = arith.addf %121, %133 : vector<1x256xf32>
    %c239_i32 = arith.constant 239 : i32
    %135 = tpu.dynamic_rotate %27 by %c239_i32 dim 1 : vector<1x256xf32>, i32 -> vector<1x256xf32>
    %c239_i32_56 = arith.constant 239 : i32
    %136 = tpu.dynamic_rotate %30 by %c239_i32_56 dim 1 : vector<1x256xf32>, i32 -> vector<1x256xf32>
    %c8 = arith.constant 8 : index
    %c0_57 = arith.constant 0 : index
    %c0_58 = arith.constant 0 : index
    %137 = vector.load %arg4[%c8, %c0_57, %c0_58] : memref<9x1x256xf32, #tpu.memory_space<vmem>>, vector<1x1x256xf32>
    %138 = vector.shape_cast %137 : vector<1x1x256xf32> to vector<1x256xf32>
    %c8_59 = arith.constant 8 : index
    %139 = memref.load %arg5[%c8_59] : memref<18xf32, #tpu.memory_space<smem>>
    %140 = vector.broadcast %139 : f32 to vector<1x256xf32>
    %141 = arith.mulf %140, %135 : vector<1x256xf32>
    %c17 = arith.constant 17 : index
    %142 = memref.load %arg5[%c17] : memref<18xf32, #tpu.memory_space<smem>>
    %143 = vector.broadcast %142 : f32 to vector<1x256xf32>
    %144 = arith.mulf %143, %136 : vector<1x256xf32>
    %145 = arith.addf %141, %144 : vector<1x256xf32>
    %146 = arith.mulf %138, %145 : vector<1x256xf32>
    %147 = arith.addf %134, %146 : vector<1x256xf32>
    %cst_60 = arith.constant 0.000000e+00 : f32
    %148 = vector.broadcast %cst_60 : f32 to vector<1x256xf32>
    %149 = arith.subf %148, %147 : vector<1x256xf32>
    %150 = math.exp %149 : vector<1x256xf32>
    %cst_61 = arith.constant 1.000000e+00 : f32
    %151 = vector.broadcast %cst_61 : f32 to vector<1x256xf32>
    %152 = arith.addf %151, %150 : vector<1x256xf32>
    %153 = tpu.reciprocal %152 {approx = true} : vector<1x256xf32> -> vector<1x256xf32>
    %154 = vector.shape_cast %153 : vector<1x256xf32> to vector<1x1x256xf32>
    %155 = vector.broadcast %154 : vector<1x1x256xf32> to vector<1x64x256xf32>
    %156 = arith.mulf %26, %155 : vector<1x64x256xf32>
    %157 = arith.addf %156, %0 : vector<1x64x256xf32>
    %c0_62 = arith.constant 0 : index
    %c0_63 = arith.constant 0 : index
    %c0_64 = arith.constant 0 : index
    %158 = vector.load %arg7[%c0_62, %c0_63, %c0_64] : memref<1x64x256xf32, #tpu.memory_space<vmem>>, vector<1x64x256xf32>
    tpu.vector_store %arg7[%c0_62, %c0_63, %c0_64], %157 {strides = array<i32>} : memref<1x64x256xf32, #tpu.memory_space<vmem>>, vector<1x64x256xf32>,
    return
  }
  func.func @transform_0(%arg0: i32) -> (i32, i32, i32) {
    %c0_i32 = arith.constant 0 : i32
    %c0_i32_0 = arith.constant 0 : i32
    %c0_i32_1 = arith.constant 0 : i32
    return %arg0, %c0_i32, %c0_i32_0 : i32, i32, i32
  }
  func.func @transform_1(%arg0: i32) -> (i32, i32) {
    %c0_i32 = arith.constant 0 : i32
    %c0_i32_0 = arith.constant 0 : i32
    %c0_i32_1 = arith.constant 0 : i32
    return %c0_i32, %c0_i32_0 : i32, i32
  }
  func.func @transform_2(%arg0: i32) -> (i32, i32) {
    %c0_i32 = arith.constant 0 : i32
    %c0_i32_0 = arith.constant 0 : i32
    %c0_i32_1 = arith.constant 0 : i32
    return %c0_i32, %c0_i32_0 : i32, i32
  }
  func.func @transform_3(%arg0: i32) -> (i32, i32, i32) {
    %c0_i32 = arith.constant 0 : i32
    %c0_i32_0 = arith.constant 0 : i32
    %c0_i32_1 = arith.constant 0 : i32
    %c0_i32_2 = arith.constant 0 : i32
    return %c0_i32, %c0_i32_0, %c0_i32_1 : i32, i32, i32
  }
  func.func @transform_4(%arg0: i32) -> i32 {
    %c0_i32 = arith.constant 0 : i32
    %c0_i32_0 = arith.constant 0 : i32
    return %c0_i32 : i32
  }
  func.func @transform_5(%arg0: i32) -> i32 {
    %c0_i32 = arith.constant 0 : i32
    %c0_i32_0 = arith.constant 0 : i32
    return %c0_i32 : i32
  }
  func.func @transform_6(%arg0: i32) -> (i32, i32, i32) {
    %c0_i32 = arith.constant 0 : i32
    %c0_i32_0 = arith.constant 0 : i32
    %c0_i32_1 = arith.constant 0 : i32
    return %arg0, %c0_i32, %c0_i32_0 : i32, i32, i32
  }
}

</mosaic_0001>

<bundles_post_ra>
// kernel: tpu_custom_call.1
= control target key start
LH: loop header
LB: loop body
LE: loop exit
PB: predicated region body
PF: predicated region fallthrough
CT: control target
= control target key end

     0   :  { %s2610_s0 = inlined_call_operand.hbm [shape: f32[2,64,256], index: 0, kind: input, shape index: {}]   ;;  %s2611_s1 = inlined_call_operand.vmem [shape: f32[64,4], index: 1, kind: input, shape index: {}]   ;;  %s2612_s2 = inlined_call_operand.vmem [shape: f32[4,64], index: 2, kind: input, shape index: {}]   ;;  %s2613_s3 = inlined_call_operand.vmem [shape: f32[9,1,256], index: 3, kind: input, shape index: {}]   ;;  %s2614_s4 = inlined_call_operand.vmem [shape: f32[18], index: 4, kind: input, shape index: {}]   ;;  %s2615_s5 = inlined_call_operand.<no memory space> [shape: f32[1], index: 5, kind: input, shape index: {}]   ;;  %s2616_s6 = inlined_call_operand.hbm [shape: f32[2,64,256], index: 6, kind: output, shape index: {}]  }
   0x1   :  { %11 = sst [smem:[#allocation2]] %s2615_s5 }
   0x2   :  { %12 = vsyncpa [#allocation4], 0 }
   0x3   :  { %14 = vsyncpa [#allocation4 + $0x1], 0 }
   0x4   :  { %15 = vsyncpa [#allocation6], 0 }
   0x5   :  { %16 = vsyncpa [#allocation5], 0 }
   0x6   :  { %18 = vsyncpa [#allocation5 + $0x1], 0  ;;  %s1853_s23 = smov 0   ;;  %s1855_s24 = smov 0  }
   0x7   :  { %s1857_s25 = smov 0   ;;  %s1859_s26 = smov 0  }
   0x8 LB: > { %s1874_s5 = sadd.s32 4294967295, %s1795_s26   ;;  %s1440_s27 = sadd.s32 4294967294, %s1795_s26   ;;  %s1795_s26 = sphi %s1859_s26, %s2636_s26   ;;  %s1791_s25 = sphi %s1857_s25, %s2635_s25   ;;  %s1787_s24 = sphi %s1855_s24, %s2634_s24   ;;  %s1783_s23 = sphi %s1853_s23, %s2633_s23  }
   0x9   : > { %s1878_s28 = sadd.s32 1, %s1795_s26   ;;  %s31_s29 = sadd.s32 1, %s1791_s25 }
   0xa   : > { %s28_s30 = ssub.s32 %s1795_s26, %s1878_s28  ;;  %p38_p0 = scmp.ne.s32.totalorder %s1791_s25, %s1787_s24 }
   0xb   : > { %p29_p1 = scmp.eq.s32.totalorder %s28_s30, 0  ;;  %p39_p2 = scmp.eq.s32.totalorder %s1795_s26, 0 }
   0xc   : > { %p44_p3 = scmp.ne.s32.totalorder %s1787_s24, %s1783_s23  ;;  %p2618_p4 = scmp.eq.s32.totalorder %s1874_s5, 0 }
   0xd   : > { %s1890_s7 = scalar_select %p29_p1, %s1791_s25, %s31_s29  }
   0xe   : > { %p1892_p5 = por %p39_p2, %p38_p0  ;;  %p1898_p6 = por %p2618_p4, %p44_p3 }
   0xf   : > { %p173_p7 = scmp.eq.s32.totalorder %s1874_s5, 1  ;;  %p179_p8 = scmp.eq.s32.totalorder %s1440_s27, 1 }
  0x10   : > { %s2621_s9 = scalar_select %p1898_p6, 1, 0 }
  0x11   : > { %p1441_p9 = scmp.ge.s32.totalorder %s1795_s26, 1  ;;  %p186_p10 = scmp.lt.s32.totalorder %s1795_s26, 3 }
  0x12   : > { %p1905_p11 = por %p173_p7, %p38_p0  ;;  %p1909_p12 = por %p179_p8, %p44_p3 }
  0x13   : > { %p1913_p13 = pnand %p1441_p9, %p186_p10  ;;  %s208_s15 = sshll.u32 %s2614_s4, 4  ;;  %s209_s15 = int_to_ptr.vmem [resolvable:$true] %s208_s15 }
  0x14   : > { %s2622_s10 = scalar_select %p1905_p11, 1, 0 }
  0x15   : > { %s2623_s11 = scalar_select %p1909_p12, 1, 0 }
  0x16   : > { %p1592_p1 = pneg %p1913_p13  ;;  %p1605_p2 = scmp.lt.s32.totalorder %s1795_s26, 2 }
  0x17   : > { %s222_s17 = sand.u32 1, %s1791_s25   ;;  %s1680_s20 = scalar_lea.vmem %s209_s15, 16 }
  0x18   : > { %p1926_p7 = pnand %p1592_p1, %p2618_p4  ;;  %p1933_p3 = pnand %p1605_p2, %p1892_p5 }
  0x19   : > { %s1444_s19 = sshll.u32 %s222_s17, 7  ;;  %p1681_p8 = scmp.ne.s32.totalorder %s209_s15, %s1680_s20 }
  0x1a   : > { %p1682_p9 = pneg %p1926_p7  ;;  %p1688_p12 = scmp.lt.s32.totalorder %s209_s15, %s209_s15 }
  0x1b   : > { %p1689_p11 = scmp.lt.s32.totalorder %s1680_s20, %s1680_s20 }
  0x1c   : > { %p1683_p10 = pnand %p1682_p9, %p1681_p8 }
  0x1d   : > { %p1690_p1 = por %p1689_p11, %p1688_p12 }
  0x1e   : > { %p1684_p0 = pneg %p1683_p10 }
  0x20   : > { %p1691_p4 = pnand %p1690_p1, %p1684_p0 }
  0x22   : > { %1694 = shalt.err (!%p1691_p4)
}
  0x23   : > { %s1797_s21 = smov [#allocation7]   ;;  %s1487_s22 = sshll.u32 %s1795_s26, 11 }
  0x24   : > { %1595 = dma.vmem_to_smem (!%p1926_p7), %s209_s15, 16, %s1797_s21, [#allocation6]  }
  0x25   : > { %s226_s27 = scalar_lea.vmem [#allocation3], %s1444_s19  ;;  %s1945_s13 = scalar_lea.hbm %s2610_s0, %s1487_s22 }
  0x26   : > { %s233_s29 = sshll.u32 %s226_s27, 4  ;;  %s1949_s14 = scalar_lea.sflag [#allocation4], %s222_s17  ;;  %s1947_s29 = int_to_ptr.vmem [resolvable:$true] %s233_s29 }
  0x27   : > { %s1695_s16 = scalar_lea.hbm %s1945_s13, 2048  ;;  %p1697_p5 = pneg %p1933_p3 }
  0x28   : > { %p1696_p4 = scmp.ne.s32.totalorder %s1945_s13, %s1695_s16  ;;  %s1700_s20 = scalar_lea.hbm %s2610_s0, 4096 }
  0x29   : > { %p1701_p0 = scmp.lt.u32.totalorder %s1945_s13, %s2610_s0  ;;  %p1702_p2 = scmp.lt.u32.totalorder %s1700_s20, %s1695_s16 }
  0x2a   : > { %p1698_p11 = pnand %p1697_p5, %p1696_p4  ;;  %p1704_p8 = scmp.lt.u32.totalorder %s1695_s16, %s1945_s13 }
  0x2b   : > { %p1703_p7 = por %p1702_p2, %p1701_p0 }
  0x2c   : > { %p1699_p12 = pneg %p1698_p11 }
  0x2d   : > { %p1705_p9 = por %p1704_p8, %p1703_p7 }
  0x2f   : > { %p1706_p10 = pnand %p1705_p9, %p1699_p12 }
  0x31   : > { %1709 = shalt.err (!%p1706_p10)
}
  0x32   : > { %s1710_s17 = scalar_lea.vmem %s1947_s29, 2048  ;;  %s1798_s27 = smov [#allocation3]  }
  0x33   : > { %p1711_p1 = scmp.ne.s32.totalorder %s1947_s29, %s1710_s17  ;;  %s1715_s30 = sshll.u32 %s1798_s27, 4  ;;  %s1716_s30 = int_to_ptr.vmem [resolvable:$false] %s1715_s30 }
  0x34   : > { %s1717_s8 = scalar_lea.vmem %s1716_s30, 4096  ;;  %p1718_p6 = scmp.lt.s32.totalorder %s1947_s29, %s1716_s30 }
  0x35   : > { %p1713_p4 = pnand %p1711_p1, %p1697_p5  ;;  %p1719_p0 = scmp.lt.s32.totalorder %s1717_s8, %s1710_s17 }
  0x37   : > { %p1714_p11 = pneg %p1713_p4  ;;  %p1720_p2 = por %p1719_p0, %p1718_p6 }
  0x39   : > { %p1721_p7 = pnand %p1720_p2, %p1714_p11 }
  0x3b   : > { %1724 = shalt.err (!%p1721_p7)
}
  0x3c   : > { %s1799_s16 = smov 256   ;;  %s1800_s15 = smov 16  }
  0x3d   : > { %1599 = dma.hbm_to_vmem [thread:$0]  (!%p1933_p3), %s1945_s13, 2048, %s1947_s29, %s1949_s14, %s1799_s16, %s1799_s16, %s1800_s15  }
  0x3e   : > { %245 = sbr.rel (%p1913_p13) target bundleno = 1110 (0x456), region = 44  ;;  %s1980_s19 = sand.u32 (!%p1913_p13), 1, %s1787_s24  }
  0x3f   : > { %s1448_s20 = sshll.u32 (!%p1913_p13), %s1980_s19, 7  ;;  %s248_s21 = scalar_lea.sflag (!%p1913_p13), [#allocation4], %s1980_s19 }
  0x40   : > { %s1986_s22 = scalar_lea.vmem (!%p1913_p13), [#allocation3], %s1448_s20  ;;  %p2627_p6 = scmp.ne.s32.totalorder (!%p1913_p13), %s2621_s9, 0 }
  0x45   : > { %1770 = dma.done.wait (%p2627_p6), %s248_s21, 2048  }
  0x46   : > { %1772 = vsyncadd (%p2627_p6), %s248_s21, 4294965248  ;;  %p2628_p3 = scmp.eq.s32.totalorder %s1874_s5, 0 }
  0x48   : > { %1774 = dma.done.wait (%p2628_p3), [#allocation6], 16   ;;  %p2629_p13 = pmov %p2628_p3 }
  0x4a   : > { %1776 = vsyncadd (%p2629_p13), [#allocation6], 4294967280 }
  0x4b   : > { %260 = sfence }
  0x4c   : > { %v1997_v0 = vld [vmem:[%s1986_s22 + $0x20] sm:$0xff]  ;;  %v2000_v1 = vld [vmem:[%s1986_s22 + $0x28] sm:$0xff]  ;;  %v2011_v5 = vld [vmem:[%s1986_s22 + $0x10] sm:$0xff]  ;;  %v1801_v35 = vmov 0.0|0.0   ;;  %vm1802_vm0 = vmmov 0   ;;  %v1803_v45 = vmov 0.0   ;;  %v373_v48 = vlaneseq }
  0x4d   : > { %v2003_v2 = vld [vmem:[%s1986_s22] sm:$0xff]  ;;  %v331_v3 = vadd.f32 %v2000_v1, %v1997_v0  ;;  %v2008_v4 = vld [vmem:[%s1986_s22 + $0x8] sm:$0xff]  ;;  %v2014_v6 = vld [vmem:[%s1986_s22 + $0x18] sm:$0xff]  ;;  %v307_v17 = vmax.f32 %v1997_v0, %v2000_v1  ;;  %1571 = vmatprep.subr.bf16.mxu1 %v1801_v35  ;;  %1559 = vmatprep.subr.bf16.mxu0 %v1801_v35  ;;  %vm384_vm1 = vcmask 130112   ;;  %vm391_vm2 = vcmask 195712   ;;  %s1468_s14 = sld [smem:[#allocation7 + $0x4]] }
  0x4e   : > { %v325_v7 = vadd.f32 %v2008_v4, %v2003_v2  ;;  %v301_v8 = vmax.f32 %v2003_v2, %v2008_v4  ;;  %v328_v9 = vadd.f32 %v2014_v6, %v2011_v5  ;;  %v2023_v10 = vld [vmem:[%s1986_s22 + $0x30] sm:$0xff]  ;;  %v2026_v11 = vld [vmem:[%s1986_s22 + $0x38] sm:$0xff]  ;;  %v304_v13 = vmax.f32 %v2011_v5, %v2014_v6  ;;  %v2033_v14 = vld [vmem:[%s1986_s22 + $0x40] sm:$0xff]  ;;  %1546 = vmatprep.mubr.msk.f32.mxu1 %vm1802_vm0, %v1803_v45  ;;  %s1469_s17 = sld [smem:[#allocation7 + $0xd]]  ;;  %s1804_s27 = smov 17  }
  0x4f   : > { %332 = vadd.xlane.f32.xlu1 %v331_v3  ;;  %v334_v12 = vadd.f32 %v2026_v11, %v2023_v10  ;;  %v2036_v15 = vld [vmem:[%s1986_s22 + $0x48] sm:$0xff]  ;;  %v2043_v18 = vld [vmem:[%s1986_s22 + $0x50] sm:$0xff]  ;;  %v2046_v19 = vld [vmem:[%s1986_s22 + $0x58] sm:$0xff]  ;;  %v310_v21 = vmax.f32 %v2023_v10, %v2026_v11  ;;  %1527 = vmatprep.mubr.msk.f32.mxu0 %vm1802_vm0, %v1803_v45  ;;  %v2108_v51 = vand.u32 127, %v373_v48  ;;  %v2111_v55 = vshrl.u32 %v373_v48, 7  ;;  %s1805_s30 = smov 16  }
  0x50   : > { %326 = vadd.xlane.f32.xlu0 %v325_v7  ;;  %v337_v16 = vadd.f32 %v2036_v15, %v2033_v14  ;;  %v340_v20 = vadd.f32 %v2046_v19, %v2043_v18  ;;  %v2053_v22 = vld [vmem:[%s1986_s22 + $0x60] sm:$0xff]  ;;  %v2056_v23 = vld [vmem:[%s1986_s22 + $0x68] sm:$0xff]  ;;  %v313_v25 = vmax.f32 %v2033_v14, %v2036_v15  ;;  %v2063_v26 = vld [vmem:[%s1986_s22 + $0x70] sm:$0xff]  ;;  %v316_v29 = vmax.f32 %v2043_v18, %v2046_v19  ;;  %s1806_s8 = smov 15   ;;  %s1807_s16 = smov 1  }
  0x51   : > { %v343_v24 = vadd.f32 %v2056_v23, %v2053_v22  ;;  %v2066_v27 = vld [vmem:[%s1986_s22 + $0x78] sm:$0xff]  ;;  %v319_v31 = vmax.f32 %v2053_v22, %v2056_v23  ;;  %v357_v32 = vld [vmem:[%s2611_s1] sm:$0xff]  ;;  %v358_v33 = vld [vmem:[%s2611_s1 + $0x8] sm:$0xff]  ;;  %v379_v53 = vadd.s32 4294967288, %v2108_v51  ;;  %v386_v57 = vadd.s32 4294967280, %v2108_v51  ;;  %s1808_s15 = smov 127  }
  0x52   : > { %v346_v28 = vadd.f32 %v2066_v27, %v2063_v26  ;;  %v322_v30 = vmax.f32 %v2063_v26, %v2066_v27  ;;  %v1560_v34 = vpack.c.bf16 %v358_v33, %v357_v32  ;;  %v359_v36 = vld [vmem:[%s2611_s1 + $0x10] sm:$0xff]  ;;  %v360_v37 = vld [vmem:[%s2611_s1 + $0x18] sm:$0xff]  ;;  %v361_v39 = vld [vmem:[%s2611_s1 + $0x20] sm:$0xff]  ;;  %v393_v60 = vadd.s32 4294967272, %v2108_v51  ;;  %s1809_s21 = smov 113   ;;  %s1810_s9 = smov 112  }
  0x53   : > { %302 = vmax.xlane.f32.xlu1 %v301_v8  ;;  %v1563_v38 = vpack.c.bf16 %v360_v37, %v359_v36  ;;  %v362_v40 = vld [vmem:[%s2611_s1 + $0x28] sm:$0xff]  ;;  %v363_v42 = vld [vmem:[%s2611_s1 + $0x30] sm:$0xff]  ;;  %v364_v43 = vld [vmem:[%s2611_s1 + $0x38] sm:$0xff]  ;;  %v382_v58 = vsub.s32 %v379_v53, %v2111_v55  ;;  %v400_v62 = vadd.s32 4294967264, %v2108_v51  ;;  %v377_v63 = vsub.s32 %v2108_v51, %v2111_v55  ;;  %s1811_s12 = smov 111   ;;  %s2265_s18 = sld [smem:[#allocation7]] }
  0x54   : > { %329 = vadd.xlane.f32.xlu0 %v328_v9  ;;  %1573 = vmatpush3.bf16.msra.mxu1 %v1560_v34  ;;  %v1566_v41 = vpack.c.bf16 %v362_v40, %v361_v39  ;;  %v1569_v44 = vpack.c.bf16 %v364_v43, %v363_v42  ;;  %v407_v7 = vadd.s32 4294967256, %v2108_v51  ;;  %v414_v9 = vadd.s32 4294967248, %v2108_v51  ;;  %s2267_s29 = sld [smem:[#allocation7 + $0x1]]  ;;  %p2630_p12 = scmp.ne.s32.totalorder %s2622_s10, 0 }
  0x55   : > { %1574 = vmatprep.subr.bf16.mxu1 %v1801_v35  ;;  %1561 = vmatpush3.bf16.msra.mxu0 %v1560_v34  ;;  %vm398_vm3 = vcmask 261312   ;;  %vm405_vm4 = vcmask 326912   ;;  %vm412_vm5 = vcmask 392512   ;;  %vm419_vm6 = vcmask 458112   ;;  %s2269_s13 = sld [smem:[#allocation7 + $0x9]] }
  0x56   : > { %1562 = vmatprep.subr.bf16.mxu0 %v1801_v35  ;;  %v417_v32 = vsub.s32 %v414_v9, %v2111_v55  ;;  %vm426_vm7 = vcmask 523712   ;;  %vm428_vm8 = vcmask 523264   ;;  %vm627_vm9 = vcmask 1043456  }
  0x57   : > { %335 = vadd.xlane.f32.xlu1 %v334_v12  ;;  %v389_v12 = vsub.s32 %v386_v57, %v2111_v55  ;;  %vm623_vm10 = vcmask 31744   ;;  %vm890_vm11 = vcmp.lt.s32.totalorder %v2108_v51, 17  ;;  %vm934_vm12 = vcmp.lt.s32.totalorder %v2108_v51, 16 }
  0x58   : > { %305 = vmax.xlane.f32.xlu0 %v304_v13  ;;  %1576 = vmatpush3.bf16.msra.mxu1 %v1563_v38  ;;  %vm979_vm13 = vcmp.lt.s32.totalorder %v2108_v51, 15  ;;  %vm1024_vm14 = vcmp.lt.s32.totalorder %v2108_v51, 1  ;;  %vm1101_vm15 = vcmp.lt.s32.totalorder %v2108_v51, 127 }
  0x59   : > { %1577 = vmatprep.subr.bf16.mxu1 %v1801_v35  ;;  %1564 = vmatpush3.bf16.msra.mxu0 %v1563_v38 }
  0x5a   : > { %1565 = vmatprep.subr.bf16.mxu0 %v1801_v35 }
  0x5b   : > { %338 = vadd.xlane.f32.xlu1 %v337_v16  ;;  %v396_v16 = vsub.s32 %v393_v60, %v2111_v55 }
  0x5c   : > { %308 = vmax.xlane.f32.xlu0 %v307_v17  ;;  %1579 = vmatpush3.bf16.msra.mxu1 %v1566_v41 }
  0x5d   : > { %1580 = vmatprep.subr.bf16.mxu1 %v1801_v35  ;;  %1567 = vmatpush3.bf16.msra.mxu0 %v1566_v41 }
  0x5e   : > { %1568 = vmatprep.subr.bf16.mxu0 %v1801_v35 }
  0x5f   : > { %341 = vadd.xlane.f32.xlu1 %v340_v20 }
  0x60   : > { %311 = vmax.xlane.f32.xlu0 %v310_v21  ;;  %1582 = vmatpush3.bf16.msra.mxu1 %v1569_v44 }
  0x61   : > { %1570 = vmatpush3.bf16.msra.mxu0 %v1569_v44  ;;  %1549 = vmatprep.subr.mxu1 %v1803_v45 }
  0x62   : > { %1554 = vmatprep.subr.mxu0 %v1803_v45 }
  0x63   : > { %344 = vadd.xlane.f32.xlu1 %v343_v24  ;;  %v403_v24 = vsub.s32 %v400_v62, %v2111_v55 }
  0x64   : > { %314 = vmax.xlane.f32.xlu0 %v313_v25 }
  0x67   : > { %347 = vadd.xlane.f32.xlu1 %v346_v28 }
  0x68   : > { %317 = vmax.xlane.f32.xlu0 %v316_v29  ;;  %v410_v29 = vsub.s32 %v407_v7, %v2111_v55 }
  0x6b   : > { %323 = vmax.xlane.f32.xlu1 %v322_v30 }
  0x6c   : > { %320 = vmax.xlane.f32.xlu0 %v319_v31  ;;  %v421_v31 = vadd.s32 4294967240, %v2108_v51 }
  0x6e   : > { %v424_v42 = vsub.s32 %v421_v31, %v2111_v55 }
  0xdc   : > { %v333_v46 = vpop.xlane.xlu1 %332 }
  0xdd   : > { %v327_v47 = vpop.xlane.xlu0 %326  ;;  %v351_v21 = vmul.f32 0.00390625, %v333_v46 }
  0xde   : > { %v349_v3 = vmul.f32 0.00390625, %v327_v47 }
  0xdf   : > { %v523_v38 = vrot.slane %v351_v21, %v389_v12  ;;  %v502_v21 = vld [vmem:[%s2612_s2] sm:$0xf] }
  0xe0   : > { %v2106_v49 = vpop.xlane.xlu1 %302  ;;  %v514_v28 = vrot.slane %v349_v3, %v377_v63 }
  0xe1   : > { %v330_v50 = vpop.xlane.xlu0 %329  ;;  %v378_v48 = vrot.slane %v2106_v49, %v377_v63 }
  0xe2   : > { %v350_v59 = vmul.f32 0.00390625, %v330_v50 }
  0xe4   : > { %v336_v52 = vpop.xlane.xlu1 %335  ;;  %v518_v13 = vrot.slane %v350_v59, %v382_v58 }
  0xe5   : > { %v306_v54 = vpop.xlane.xlu0 %305  ;;  %v352_v17 = vmul.f32 0.00390625, %v336_v52 }
  0xe6   : > { %v519_v34 = vsel %vm384_vm1, %v518_v13, %v514_v28  ;;  %v383_v40 = vrot.slane %v306_v54, %v382_v58 }
  0xe7   : > { %v528_v35 = vrot.slane %v352_v17, %v396_v16  ;;  %v524_v43 = vsel %vm391_vm2, %v523_v38, %v519_v34 }
  0xe8   : > { %v339_v56 = vpop.xlane.xlu1 %338  ;;  %v385_v58 = vsel %vm384_vm1, %v383_v40, %v378_v48  ;;  %v781_v40 = vsub.s32 0, %v2111_v55  ;;  %vm1191_vm1 = vcmp.lt.s32.totalorder %v2108_v51, 112 }
  0xe9   : > { %v309_v61 = vpop.xlane.xlu0 %308  ;;  %v353_v25 = vmul.f32 0.00390625, %v339_v56  ;;  %v529_v50 = vsel %vm398_vm3, %v528_v35, %v524_v43 }
  0xea   : > { %v390_v44 = vrot.slane %v309_v61, %v389_v12 }
  0xeb   : > { %v533_v39 = vrot.slane %v353_v25, %v403_v24 }
  0xec   : > { %v342_v8 = vpop.xlane.xlu1 %341  ;;  %v392_v62 = vsel %vm391_vm2, %v390_v44, %v385_v58  ;;  %vm1236_vm2 = vcmp.lt.s32.totalorder %v2108_v51, 111 }
  0xed   : > { %v312_v20 = vpop.xlane.xlu0 %311  ;;  %v354_v30 = vmul.f32 0.00390625, %v342_v8  ;;  %v534_v57 = vsel %vm405_vm4, %v533_v39, %v529_v50 }
  0xee   : > { %v397_v52 = vrot.slane %v312_v20, %v396_v16 }
  0xef   : > { %v538_v41 = vrot.slane %v354_v30, %v410_v29 }
  0xf0   : > { %v345_v33 = vpop.xlane.xlu1 %344  ;;  %v399_v63 = vsel %vm398_vm3, %v397_v52, %v392_v62 }
  0xf1   : > { %v315_v36 = vpop.xlane.xlu0 %314  ;;  %v355_v37 = vmul.f32 0.00390625, %v345_v33  ;;  %v539_v59 = vsel %vm412_vm5, %v538_v41, %v534_v57 }
  0xf2   : > { %v404_v54 = vrot.slane %v315_v36, %v403_v24 }
  0xf3   : > { %v543_v46 = vrot.slane %v355_v37, %v417_v32 }
  0xf4   : > { %v348_v47 = vpop.xlane.xlu1 %347  ;;  %v406_v12 = vsel %vm405_vm4, %v404_v54, %v399_v63 }
  0xf5   : > { %v318_v53 = vpop.xlane.xlu0 %317  ;;  %v356_v56 = vmul.f32 0.00390625, %v348_v47  ;;  %v544_v49 = vsel %vm419_vm6, %v543_v46, %v539_v59 }
  0xf6   : > { %v411_v60 = vrot.slane %v318_v53, %v410_v29 }
  0xf7   : > { %v548_v61 = vrot.slane %v356_v56, %v424_v42 }
  0xf8   : > { %v324_v3 = vpop.xlane.xlu1 %323  ;;  %v413_v16 = vsel %vm412_vm5, %v411_v60, %v406_v12 }
  0xf9   : > { %v321_v7 = vpop.xlane.xlu0 %320  ;;  %v425_v8 = vrot.slane %v324_v3, %v424_v42  ;;  %v549_v9 = vsel %vm426_vm7, %v548_v61, %v544_v49 }
  0xfa   : > { %v418_v13 = vrot.slane %v321_v7, %v417_v32  ;;  %1547 = vmatmul.mubr.msk.f32.vlgmr.msra.gmra.mrb[0].mxu1 %vm428_vm8, %v549_v9 }
  0xfb   : > { %1551 = vmatprep.mubr.msk.f32.mxu1 %vm1802_vm0, %v1803_v45  ;;  %1550 = vmatpush3.msk.msra.mxu1 %vm627_vm9, %v502_v21 }
  0xfc   : > { %v420_v17 = vsel %vm419_vm6, %v418_v13, %v413_v16 }
  0xfd   : > { %v427_v20 = vsel %vm426_vm7, %v425_v8, %v420_v17 }
  0xfe   : > { %1528 = vmatmul.mubr.msk.f32.vlgmr.msra.gmra.mrb[0].mxu0 %vm428_vm8, %v427_v20 }
  0xff   : > { %1556 = vmatprep.mubr.msk.f32.mxu0 %vm1802_vm0, %v1803_v45  ;;  %1555 = vmatpush3.msk.msra.mxu0 %vm627_vm9, %v502_v21  ;;  %vm1146_vm0 = vcmp.lt.s32.totalorder %v2108_v51, 113  ;;  %v1476_v51 = vld [vmem:[%s2613_s3 + $0xe] sm:$0x3] }
 0x1cd   : > { %v618_v24 = vpop.f32.mrb[0].mxu1 }
 0x1ce   : > { %v622_v25 = vmax.f32 %v618_v24, 0.0  ;;  %v1548_v28 = vpop.f32.mrb[1].mxu1 }
 0x1d0   : > { %1552 = vmatmul.mubr.msk.f32.vlgmr.msra.gmra.mrb[2].mxu1 %vm623_vm10, %v622_v25 }
 0x1d1   : > { %v497_v29 = vpop.f32.mrb[0].mxu0 }
 0x1d2   : > { %v501_v30 = vmax.f32 %v497_v29, 0.0  ;;  %v1529_v31 = vpop.f32.mrb[1].mxu0 }
 0x1d4   : > { %1557 = vmatmul.mubr.msk.f32.vlgmr.msra.gmra.mrb[2].mxu0 %vm623_vm10, %v501_v30 }
 0x2a3   : > { %v697_v32 = vpop.f32.mrb[2].mxu1 }
 0x2a4   : > { %v1553_v33 = vpop.f32.mrb[3].mxu1 }
 0x2a7   : > { %v770_v34 = vpop.f32.mrb[2].mxu0 }
 0x2a8   : > { %v771_v45 = vadd.f32 %v770_v34, %v697_v32  ;;  %v1558_v35 = vpop.f32.mrb[3].mxu0 }
 0x2aa   : > { %v774_v36 = vsub.f32 0.0, %v771_v45 }
 0x2ac   : > { %v775_v37 = vmul.f32 1.442695, %v774_v36 }
 0x2ae   : > { %1656 = vpow2.f32 %v775_v37 }
 0x2b8   : > { %v1657_v38 = vpop.eup %1656 }
 0x2b9   : > { %v777_v39 = vadd.f32 1.0, %v1657_v38 }
 0x2bb   : > { %1658 = vrcp.f32 %v777_v39 }
 0x2c5   : > { %v1659_v41 = vpop.eup %1658 }
 0x2c6   : > { %v782_v42 = vrot.slane %v1659_v41, %v781_v40 }
 0x2c8   : > { %788 = vbcast.lane.b32.xlu1 %v782_v42, 264  ;;  %784 = vbcast.lane.b32.xlu0 %v782_v42, 256 }
 0x2cc   : > { %792 = vbcast.lane.b32.xlu1 %v782_v42, 272  ;;  %800 = vbcast.lane.b32.xlu0 %v782_v42, 288 }
 0x2d0   : > { %796 = vbcast.lane.b32.xlu1 %v782_v42, 280  ;;  %808 = vbcast.lane.b32.xlu0 %v782_v42, 304 }
 0x2d4   : > { %804 = vbcast.lane.b32.xlu1 %v782_v42, 296 }
 0x2d8   : > { %812 = vbcast.lane.b32.xlu1 %v782_v42, 312 }
 0x33a   : > { %v789_v43 = vpop.permute.xlu1 %788  ;;  %v785_v44 = vpop.permute.xlu0 %784 }
 0x33b   : > { %v2156_v46 = vmul.f32 %v789_v43, %v2011_v5  ;;  %v2159_v47 = vmul.f32 %v789_v43, %v2014_v6  ;;  %v2162_v48 = vmul.f32 %v785_v44, %v2003_v2  ;;  %v2165_v50 = vmul.f32 %v785_v44, %v2008_v4 }
 0x33d   : > { %v856_v5 = vadd.f32 %v2156_v46, %v2162_v48  ;;  %v869_v6 = vadd.f32 %v2159_v47, %v2165_v50 }
 0x33e   : > { %v793_v52 = vpop.permute.xlu1 %792  ;;  %v801_v57 = vpop.permute.xlu0 %800 }
 0x33f   : > { %v2168_v53 = vmul.f32 %v793_v52, %v1997_v0  ;;  %v2171_v56 = vmul.f32 %v793_v52, %v2000_v1  ;;  %v2190_v60 = vmul.f32 %v801_v57, %v2033_v14  ;;  %v2193_v61 = vmul.f32 %v801_v57, %v2036_v15 }
 0x341   : > { %v830_v2 = vmax.f32 %v2162_v48, %v2168_v53  ;;  %v843_v4 = vmax.f32 %v2165_v50, %v2171_v56  ;;  %v857_v0 = vadd.f32 %v856_v5, %v2168_v53  ;;  %v870_v58 = vadd.f32 %v869_v6, %v2171_v56 }
 0x342   : > { %v797_v54 = vpop.permute.xlu1 %796  ;;  %v809_v49 = vpop.permute.xlu0 %808 }
 0x343   : > { %v2184_v1 = vmul.f32 %v797_v54, %v2023_v10  ;;  %v2187_v59 = vmul.f32 %v797_v54, %v2026_v11  ;;  %v832_v63 = vmax.f32 %v830_v2, %v2190_v60  ;;  %v845_v7 = vmax.f32 %v843_v4, %v2193_v61 }
 0x344   : > { %v2212_v13 = vmul.f32 %v809_v49, %v2053_v22  ;;  %v2215_v16 = vmul.f32 %v809_v49, %v2056_v23  ;;  %v1068_v49 = vstv %s1468_s14  ;;  %s2271_s14 = sld [smem:[#allocation7 + $0x2]] }
 0x345   : > { %v858_v62 = vadd.f32 %v857_v0, %v2184_v1  ;;  %v871_v3 = vadd.f32 %v870_v58, %v2187_v59  ;;  %v831_v9 = vmax.f32 %v2156_v46, %v2184_v1  ;;  %v844_v12 = vmax.f32 %v2159_v47, %v2187_v59 }
 0x346   : > { %v805_v10 = vpop.permute.xlu1 %804  ;;  %v834_v28 = vmax.f32 %v832_v63, %v2212_v13  ;;  %v847_v29 = vmax.f32 %v845_v7, %v2215_v16  ;;  %v1072_v63 = vstv %s1469_s17  ;;  %s2277_s17 = sld [smem:[#allocation7 + $0x3]] }
 0x347   : > { %v2200_v8 = vmul.f32 %v805_v10, %v2043_v18  ;;  %v2203_v11 = vmul.f32 %v805_v10, %v2046_v19  ;;  %v859_v14 = vadd.f32 %v858_v62, %v2190_v60  ;;  %v872_v15 = vadd.f32 %v871_v3, %v2193_v61 }
 0x349   : > { %v860_v18 = vadd.f32 %v859_v14, %v2200_v8  ;;  %v873_v19 = vadd.f32 %v872_v15, %v2203_v11  ;;  %v833_v17 = vmax.f32 %v831_v9, %v2200_v8  ;;  %v846_v20 = vmax.f32 %v844_v12, %v2203_v11 }
 0x34a   : > { %v813_v21 = vpop.permute.xlu1 %812 }
 0x34b   : > { %v2222_v24 = vmul.f32 %v813_v21, %v2063_v26  ;;  %v2225_v25 = vmul.f32 %v813_v21, %v2066_v27  ;;  %v861_v22 = vadd.f32 %v860_v18, %v2212_v13  ;;  %v874_v23 = vadd.f32 %v873_v19, %v2215_v16 }
 0x34d   : > { %v835_v30 = vmax.f32 %v833_v17, %v2222_v24  ;;  %v848_v31 = vmax.f32 %v846_v20, %v2225_v25  ;;  %v862_v32 = vadd.f32 %v861_v22, %v2222_v24  ;;  %v875_v26 = vadd.f32 %v874_v23, %v2225_v25 }
 0x34f   : > { %v836_v33 = vmax.f32 %v834_v28, %v835_v30  ;;  %v849_v34 = vmax.f32 %v847_v29, %v848_v31  ;;  %v863_v27 = vrot.slane %v862_v32, 4  ;;  %v876_v45 = vrot.slane %v875_v26, 4 }
 0x351   : > { %v837_v35 = vrot.slane %v836_v33, 4  ;;  %v850_v36 = vrot.slane %v849_v34, 4  ;;  %v864_v37 = vadd.f32 %v863_v27, %v862_v32  ;;  %v877_v38 = vadd.f32 %v876_v45, %v875_v26 }
 0x353   : > { %v838_v39 = vmax.f32 %v836_v33, %v837_v35  ;;  %v851_v41 = vmax.f32 %v849_v34, %v850_v36  ;;  %v865_v42 = vrot.slane %v864_v37, 2  ;;  %v878_v43 = vrot.slane %v877_v38, 2 }
 0x354   : > { %v1812_v35 = vmov 1966171168  }
 0x355   : > { %v839_v44 = vrot.slane %v838_v39, 2  ;;  %v852_v52 = vrot.slane %v851_v41, 2  ;;  %v866_v57 = vadd.f32 %v865_v42, %v864_v37  ;;  %v879_v5 = vadd.f32 %v878_v43, %v877_v38 }
 0x356   : > { %v914_v36 = vunpack.c.l.s4 %v1812_v35 }
 0x357   : > { %v840_v6 = vmax.f32 %v838_v39, %v839_v44  ;;  %v853_v2 = vmax.f32 %v851_v41, %v852_v52  ;;  %v867_v4 = vrot.slane %v866_v57, 1  ;;  %v880_v54 = vrot.slane %v879_v5, 1 }
 0x358   : > { %v915_v39 = vunpack.c.0.s8 %v914_v36  ;;  %v901_v44 = vstv %s2265_s18  ;;  %s2312_s18 = sld [smem:[#allocation7 + $0xc]] }
 0x359   : > { %v841_v0 = vrot.slane %v840_v6, 1  ;;  %v854_v58 = vrot.slane %v853_v2, 1  ;;  %v868_v62 = vadd.f32 %v867_v4, %v866_v57  ;;  %v881_v3 = vadd.f32 %v880_v54, %v879_v5 }
 0x35a   : > { %v2291_v43 = vsub.s32 %v915_v39, %v2111_v55  ;;  %v946_v5 = vstv %s2267_s29  ;;  %s2332_s29 = sld [smem:[#allocation7 + $0xe]] }
 0x35b   : > { %v842_v7 = vmax.f32 %v840_v6, %v841_v0  ;;  %v855_v10 = vmax.f32 %v853_v2, %v854_v58  ;;  %v882_v14 = vmul.f32 0.015625, %v868_v62  ;;  %v883_v15 = vmul.f32 0.015625, %v881_v3 }
 0x35c   : > { %v905_v6 = vstv %s2269_s13  ;;  %v991_v2 = vstv %s2271_s14  ;;  %s2334_s13 = sld [smem:[#allocation7 + $0xf]]  ;;  %s2344_s14 = sld [smem:[#allocation7 + $0x10]] }
 0x35d   : > { %888 = vrot.lane.b32.xlu1 %v855_v10, %s1804_s27  ;;  %886 = vrot.lane.b32.xlu0 %v842_v7, %s1804_s27  ;;  %v1070_v9 = vmul.f32 %v1068_v49, %v855_v10  ;;  %v1073_v12 = vmul.f32 %v1072_v63, %v882_v14  ;;  %v1074_v18 = vmul.f32 %v1072_v63, %v883_v15 }
 0x35e   : > { %v1069_v19 = vmul.f32 %v1068_v49, %v842_v7 }
 0x35f   : > { %v2237_v17 = vadd.f32 %v1074_v18, %v1070_v9 }
 0x360   : > { %v2239_v20 = vadd.f32 %v1073_v12, %v1069_v19 }
 0x361   : > { %932 = vrot.lane.b32.xlu1 %v855_v10, %s1805_s30  ;;  %930 = vrot.lane.b32.xlu0 %v842_v7, %s1805_s30 }
 0x362   : > { %v1079_v21 = vcombine.low %v2239_v20, %v2237_v17 }
 0x364   : > { %v2318_v0 = vrot.slane %v1079_v21, %v2291_v43 }
 0x365   : > { %977 = vrot.lane.b32.xlu1 %v855_v10, %s1806_s8  ;;  %975 = vrot.lane.b32.xlu0 %v842_v7, %s1806_s8 }
 0x369   : > { %1022 = vrot.lane.b32.xlu1 %v855_v10, %s1807_s16  ;;  %1020 = vrot.lane.b32.xlu0 %v842_v7, %s1807_s16 }
 0x36d   : > { %1099 = vrot.lane.b32.xlu1 %v855_v10, %s1808_s15  ;;  %1097 = vrot.lane.b32.xlu0 %v842_v7, %s1808_s15 }
 0x371   : > { %1144 = vrot.lane.b32.xlu1 %v855_v10, %s1809_s21  ;;  %1142 = vrot.lane.b32.xlu0 %v842_v7, %s1809_s21 }
 0x375   : > { %1189 = vrot.lane.b32.xlu1 %v855_v10, %s1810_s9  ;;  %1187 = vrot.lane.b32.xlu0 %v842_v7, %s1810_s9 }
 0x379   : > { %1234 = vrot.lane.b32.xlu1 %v855_v10, %s1811_s12  ;;  %1232 = vrot.lane.b32.xlu0 %v842_v7, %s1811_s12 }
 0x37d   : > { %895 = vrot.lane.b32.xlu1 %v883_v15, %s1804_s27  ;;  %893 = vrot.lane.b32.xlu0 %v882_v14, %s1804_s27  ;;  %s2280_s27 = sld [smem:[#allocation7 + $0x5]] }
 0x381   : > { %939 = vrot.lane.b32.xlu1 %v883_v15, %s1805_s30  ;;  %937 = vrot.lane.b32.xlu0 %v882_v14, %s1805_s30 }
 0x383   : > { %v1113_v9 = vstv %s2280_s27  ;;  %s2427_s27 = sld [smem:[#allocation7 + $0x11]] }
 0x385   : > { %984 = vrot.lane.b32.xlu1 %v883_v15, %s1806_s8  ;;  %982 = vrot.lane.b32.xlu0 %v882_v14, %s1806_s8  ;;  %s2282_s8 = sld [smem:[#allocation7 + $0xa]] }
 0x389   : > { %1029 = vrot.lane.b32.xlu1 %v883_v15, %s1807_s16  ;;  %1027 = vrot.lane.b32.xlu0 %v882_v14, %s1807_s16  ;;  %s2284_s16 = sld [smem:[#allocation7 + $0x6]] }
 0x38b   : > { %v950_v12 = vstv %s2282_s8 }
 0x38d   : > { %1106 = vrot.lane.b32.xlu1 %v883_v15, %s1808_s15  ;;  %1104 = vrot.lane.b32.xlu0 %v882_v14, %s1808_s15  ;;  %s2298_s15 = sld [smem:[#allocation7 + $0x7]] }
 0x38f   : > { %v1158_v18 = vstv %s2284_s16  ;;  %s1488_s16 = sshll.u32 %s1874_s5, 11  ;;  %s1342_s5 = scalar_lea.sflag [#allocation5], %s1980_s19 }
 0x391   : > { %1151 = vrot.lane.b32.xlu1 %v883_v15, %s1809_s21  ;;  %1149 = vrot.lane.b32.xlu0 %v882_v14, %s1809_s21  ;;  %s2302_s21 = sld [smem:[#allocation7 + $0x8]] }
 0x395   : > { %1196 = vrot.lane.b32.xlu1 %v883_v15, %s1810_s9  ;;  %1194 = vrot.lane.b32.xlu0 %v882_v14, %s1810_s9  ;;  %s2305_s9 = sld [smem:[#allocation7 + $0xb]] }
 0x399   : > { %1241 = vrot.lane.b32.xlu1 %v883_v15, %s1811_s12  ;;  %1239 = vrot.lane.b32.xlu0 %v882_v14, %s1811_s12  ;;  %s2310_s12 = sld [smem:[#allocation2]]  ;;  %v1036_v15 = vstv %s2277_s17  ;;  %s2525_s17 = scalar_lea.vmem [#allocation8], %s1448_s20 }
 0x3cf   : > { %v889_v22 = vpop.permute.xlu1 %888  ;;  %v887_v23 = vpop.permute.xlu0 %886 }
 0x3d0   : > { %v891_v52 = vsel %vm890_vm11, %v887_v23, %v889_v22  ;;  %v892_v57 = vsel %vm890_vm11, %v889_v22, %v887_v23  ;;  %v1093_v22 = vrot.slane %v2318_v0, %v2291_v43 }
 0x3d1   : > { %v902_v58 = vmul.f32 %v901_v44, %v892_v57  ;;  %v903_v62 = vmul.f32 %v901_v44, %v891_v52 }
 0x3d3   : > { %v933_v28 = vpop.permute.xlu1 %932  ;;  %v931_v29 = vpop.permute.xlu0 %930 }
 0x3d4   : > { %v935_v63 = vsel %vm934_vm12, %v931_v29, %v933_v28  ;;  %v936_v7 = vsel %vm934_vm12, %v933_v28, %v931_v29 }
 0x3d5   : > { %v947_v23 = vmul.f32 %v946_v5, %v936_v7  ;;  %v948_v28 = vmul.f32 %v946_v5, %v935_v63  ;;  %v1203_v5 = vstv %s2298_s15  ;;  %v1040_v63 = vstv %s2312_s18  ;;  %s2545_s15 = scalar_lea.hbm %s2616_s6, %s1488_s16 }
 0x3d7   : > { %v2249_v30 = vpop.permute.xlu1 %977  ;;  %v2251_v31 = vpop.permute.xlu0 %975 }
 0x3d8   : > { %v981_v36 = vsel %vm979_vm13, %v2249_v30, %v2251_v31  ;;  %v980_v57 = vsel %vm979_vm13, %v2251_v31, %v2249_v30 }
 0x3d9   : > { %v992_v7 = vmul.f32 %v991_v2, %v981_v36  ;;  %v993_v31 = vmul.f32 %v991_v2, %v980_v57  ;;  %v1207_v57 = vstv %s2344_s14 }
 0x3db   : > { %v2253_v32 = vpop.permute.xlu1 %1022  ;;  %v2255_v26 = vpop.permute.xlu0 %1020 }
 0x3df   : > { %v2257_v33 = vpop.permute.xlu1 %1099  ;;  %v2259_v34 = vpop.permute.xlu0 %1097 }
 0x3e0   : > { %v1102_v2 = vsel %vm1101_vm15, %v2259_v34, %v2257_v33 }
 0x3e3   : > { %v2261_v27 = vpop.permute.xlu1 %1144  ;;  %v2263_v45 = vpop.permute.xlu0 %1142 }
 0x3e7   : > { %v2273_v37 = vpop.permute.xlu1 %1189  ;;  %v2275_v38 = vpop.permute.xlu0 %1187 }
 0x3eb   : > { %v2286_v41 = vpop.permute.xlu1 %1234  ;;  %v2288_v42 = vpop.permute.xlu0 %1232 }
 0x3ef   : > { %v896_v4 = vpop.permute.xlu1 %895  ;;  %v894_v54 = vpop.permute.xlu0 %893 }
 0x3f0   : > { %v897_v3 = vsel %vm890_vm11, %v894_v54, %v896_v4  ;;  %v898_v49 = vsel %vm890_vm11, %v896_v4, %v894_v54  ;;  %v995_v4 = vstv %s2305_s9  ;;  %v885_v54 = vstv %s2310_s12  ;;  %s1355_s12 = sshll.u32 %s2525_s17, 4  ;;  %s1813_s9 = smov [#allocation8]   ;;  %s2557_s12 = int_to_ptr.vmem [resolvable:$true] %s1355_s12 }
 0x3f1   : > { %v906_v10 = vmul.f32 %v905_v6, %v898_v49  ;;  %v907_v14 = vmul.f32 %v905_v6, %v897_v3  ;;  %v1248_v6 = vstv %s2302_s21  ;;  %s1729_s14 = sshll.u32 %s1813_s9, 4  ;;  %s1730_s14 = int_to_ptr.vmem [resolvable:$false] %s1729_s14 }
 0x3f2   : > { %s1731_s18 = scalar_lea.vmem %s1730_s14, 4096  ;;  %p1732_p10 = scmp.lt.s32.totalorder %s2557_s12, %s1730_s14 }
 0x3f3   : > { %v908_v19 = vadd.f32 %v906_v10, %v902_v58  ;;  %v909_v17 = vadd.f32 %v907_v14, %v903_v62  ;;  %v940_v20 = vpop.permute.xlu1 %939  ;;  %v938_v21 = vpop.permute.xlu0 %937 }
 0x3f4   : > { %v941_v29 = vsel %vm934_vm12, %v938_v21, %v940_v20  ;;  %v942_v35 = vsel %vm934_vm12, %v940_v20, %v938_v21  ;;  %v1025_v20 = vsel %vm1024_vm14, %v2255_v26, %v2253_v32  ;;  %v1026_v21 = vsel %vm1024_vm14, %v2253_v32, %v2255_v26 }
 0x3f5   : > { %v912_v39 = vcombine.low %v908_v19, %v909_v17  ;;  %v951_v44 = vmul.f32 %v950_v12, %v942_v35  ;;  %v952_v52 = vmul.f32 %v950_v12, %v941_v29 }
 0x3f7   : > { %v953_v58 = vadd.f32 %v951_v44, %v947_v23  ;;  %v954_v62 = vadd.f32 %v952_v52, %v948_v28  ;;  %v985_v3 = vpop.permute.xlu1 %984  ;;  %v983_v49 = vpop.permute.xlu0 %982  ;;  %v919_v10 = vrot.slane %v912_v39, %v2291_v43  ;;  %v1117_v23 = vstv %s2332_s29 }
 0x3f8   : > { %v986_v14 = vsel %vm979_vm13, %v983_v49, %v985_v3  ;;  %v987_v30 = vsel %vm979_vm13, %v985_v3, %v983_v49  ;;  %v1162_v28 = vstv %s2334_s13 }
 0x3f9   : > { %v957_v12 = vcombine.low %v953_v58, %v954_v62  ;;  %v996_v19 = vmul.f32 %v995_v4, %v987_v30  ;;  %v997_v17 = vmul.f32 %v995_v4, %v986_v14  ;;  %v926_v52 = vrot.slane %v919_v10, %v2291_v43  ;;  %v899_v62 = vld [vmem:[%s2613_s3] sm:$0x3] }
 0x3fa   : > { %v1037_v4 = vmul.f32 %v1036_v15, %v1026_v21  ;;  %v1038_v58 = vmul.f32 %v1036_v15, %v1025_v20  ;;  %v1114_v10 = vmul.f32 %v1113_v9, %v1102_v2  ;;  %v1147_v14 = vsel %vm1146_vm0, %v2263_v45, %v2261_v27  ;;  %v1458_v20 = vld [vmem:[%s2613_s3 + $0x2] sm:$0x3] }
 0x3fb   : > { %v964_v29 = vrot.slane %v957_v12, %v2291_v43  ;;  %v998_v35 = vadd.f32 %v996_v19, %v992_v7  ;;  %v999_v36 = vadd.f32 %v997_v17, %v993_v31  ;;  %v1030_v39 = vpop.permute.xlu1 %1029  ;;  %v1028_v44 = vpop.permute.xlu0 %1027  ;;  %v1103_v7 = vsel %vm1101_vm15, %v2257_v33, %v2259_v34 }
 0x3fc   : > { %v1031_v32 = vsel %vm1024_vm14, %v1028_v44, %v1030_v39  ;;  %v1032_v26 = vsel %vm1024_vm14, %v1030_v39, %v1028_v44  ;;  %v1148_v30 = vsel %vm1146_vm0, %v2261_v27, %v2263_v45  ;;  %v928_v17 = vmul.f32 %v926_v52, %v899_v62  ;;  %v1461_v52 = vld [vmem:[%s2613_s3 + $0x4] sm:$0x3] }
 0x3fd   : > { %v1002_v3 = vcombine.low %v998_v35, %v999_v36  ;;  %v1041_v49 = vmul.f32 %v1040_v63, %v1032_v26  ;;  %v1042_v15 = vmul.f32 %v1040_v63, %v1031_v32  ;;  %v971_v31 = vrot.slane %v964_v29, %v2291_v43 }
 0x3fe   : > { %v1115_v45 = vmul.f32 %v1113_v9, %v1103_v7  ;;  %v1159_v36 = vmul.f32 %v1158_v18, %v1147_v14  ;;  %v1160_v39 = vmul.f32 %v1158_v18, %v1148_v30  ;;  %v1192_v44 = vsel %vm1191_vm1, %v2275_v38, %v2273_v37 }
 0x3ff   : > { %v1009_v12 = vrot.slane %v1002_v3, %v2291_v43  ;;  %v1043_v33 = vadd.f32 %v1041_v49, %v1037_v4  ;;  %v1107_v34 = vpop.permute.xlu1 %1106  ;;  %v1105_v19 = vpop.permute.xlu0 %1104  ;;  %v1044_v63 = vadd.f32 %v1042_v15, %v1038_v58  ;;  %v1193_v9 = vsel %vm1191_vm1, %v2273_v37, %v2275_v38  ;;  %v1464_v37 = vld [vmem:[%s2613_s3 + $0x6] sm:$0x3] }
 0x400   : > { %v1108_v21 = vsel %vm1101_vm15, %v1105_v19, %v1107_v34  ;;  %v1109_v27 = vsel %vm1101_vm15, %v1107_v34, %v1105_v19  ;;  %v973_v18 = vmul.f32 %v1458_v20, %v971_v31  ;;  %v929_v62 = vadd.f32 %v928_v17, %v885_v54  ;;  %v1467_v34 = vld [vmem:[%s2613_s3 + $0x8] sm:$0x3] }
 0x401   : > { %v1016_v2 = vrot.slane %v1009_v12, %v2291_v43  ;;  %v1118_v29 = vmul.f32 %v1117_v23, %v1108_v21  ;;  %v1119_v35 = vmul.f32 %v1117_v23, %v1109_v27  ;;  %v1047_v32 = vcombine.low %v1043_v33, %v1044_v63 }
 0x402   : > { %v1204_v30 = vmul.f32 %v1203_v5, %v1192_v44  ;;  %v1205_v54 = vmul.f32 %v1203_v5, %v1193_v9  ;;  %v1237_v31 = vsel %vm1236_vm2, %v2288_v42, %v2286_v41  ;;  %v974_v33 = vadd.f32 %v973_v18, %v929_v62 }
 0x403   : > { %v1120_v23 = vadd.f32 %v1118_v29, %v1114_v10  ;;  %v1121_v26 = vadd.f32 %v1119_v35, %v1115_v45  ;;  %v1152_v4 = vpop.permute.xlu1 %1151  ;;  %v1150_v58 = vpop.permute.xlu0 %1149  ;;  %v1054_v3 = vrot.slane %v1047_v32, %v2291_v43  ;;  %v1018_v14 = vmul.f32 %v1461_v52, %v1016_v2  ;;  %v1470_v52 = vld [vmem:[%s2613_s3 + $0xa] sm:$0x3] }
 0x404   : > { %v1153_v49 = vsel %vm1146_vm0, %v1150_v58, %v1152_v4  ;;  %v1154_v7 = vsel %vm1146_vm0, %v1152_v4, %v1150_v58  ;;  %v1238_v63 = vsel %vm1236_vm2, %v2286_v41, %v2288_v42  ;;  %v1252_v42 = vstv %s2427_s27 }
 0x405   : > { %v1124_v38 = vcombine.low %v1120_v23, %v1121_v26  ;;  %v1163_v10 = vmul.f32 %v1162_v28, %v1153_v49  ;;  %v1164_v15 = vmul.f32 %v1162_v28, %v1154_v7  ;;  %v1061_v12 = vrot.slane %v1054_v3, %v2291_v43 }
 0x406   : > { %v1019_v2 = vadd.f32 %v1018_v14, %v974_v33  ;;  %v1250_v4 = vmul.f32 %v1248_v6, %v1238_v63  ;;  %v1473_v14 = vld [vmem:[%s2613_s3 + $0xc] sm:$0x3] }
 0x407   : > { %v1131_v28 = vrot.slane %v1124_v38, %v2291_v43  ;;  %v1165_v19 = vadd.f32 %v1163_v10, %v1159_v36  ;;  %v1166_v17 = vadd.f32 %v1164_v15, %v1160_v39  ;;  %v1197_v5 = vpop.permute.xlu1 %1196  ;;  %v1195_v20 = vpop.permute.xlu0 %1194  ;;  %v1063_v21 = vmul.f32 %v1464_v37, %v1061_v12 }
 0x408   : > { %v1198_v27 = vsel %vm1191_vm1, %v1195_v20, %v1197_v5  ;;  %v1199_v45 = vsel %vm1191_vm1, %v1197_v5, %v1195_v20  ;;  %v1095_v39 = vmul.f32 %v1467_v34, %v1093_v22  ;;  %v1479_v34 = vld [vmem:[%s2613_s3 + $0x10] sm:$0x3] }
 0x409   : > { %v1169_v29 = vcombine.low %v1165_v19, %v1166_v17  ;;  %v1208_v35 = vmul.f32 %v1207_v57, %v1198_v27  ;;  %v1209_v36 = vmul.f32 %v1207_v57, %v1199_v45  ;;  %v1138_v41 = vrot.slane %v1131_v28, %v2291_v43 }
 0x40a   : > { %v1064_v44 = vadd.f32 %v1063_v21, %v1019_v2  ;;  %v1249_v57 = vmul.f32 %v1248_v6, %v1237_v31  ;;  %v1289_v2 = vsub.s32 1, %v2111_v55 }
 0x40b   : > { %v1176_v32 = vrot.slane %v1169_v29, %v2291_v43  ;;  %v1210_v9 = vadd.f32 %v1208_v35, %v1204_v30  ;;  %v1211_v18 = vadd.f32 %v1209_v36, %v1205_v54  ;;  %v1242_v23 = vpop.permute.xlu1 %1241  ;;  %v1240_v26 = vpop.permute.xlu0 %1239  ;;  %v1140_v7 = vmul.f32 %v1470_v52, %v1138_v41 }
 0x40c   : > { %v1243_v0 = vsel %vm1236_vm2, %v1240_v26, %v1242_v23  ;;  %v1244_v22 = vsel %vm1236_vm2, %v1242_v23, %v1240_v26  ;;  %v1096_v37 = vadd.f32 %v1095_v39, %v1064_v44  ;;  %v1670_v26 = vld [vmem:[%s1986_s22 + $0x30] sm:$0xff] }
 0x40d   : > { %v1183_v58 = vrot.slane %v1176_v32, %v2291_v43  ;;  %v1214_v62 = vcombine.low %v1210_v9, %v1211_v18  ;;  %v1253_v3 = vmul.f32 %v1252_v42, %v1243_v0  ;;  %v1254_v49 = vmul.f32 %v1252_v42, %v1244_v22  ;;  %v1665_v32 = vld [vmem:[%s1986_s22 + $0x8] sm:$0xff]  ;;  %v1666_v9 = vld [vmem:[%s1986_s22 + $0x10] sm:$0xff]  ;;  %v1667_v18 = vld [vmem:[%s1986_s22 + $0x18] sm:$0xff] }
 0x40e   : > { %v1141_v31 = vadd.f32 %v1140_v7, %v1096_v37  ;;  %v1672_v22 = vld [vmem:[%s1986_s22 + $0x40] sm:$0xff] }
 0x40f   : > { %v1221_v38 = vrot.slane %v1214_v62, %v2291_v43  ;;  %v1255_v6 = vadd.f32 %v1253_v3, %v1249_v57  ;;  %v1256_v10 = vadd.f32 %v1254_v49, %v1250_v4  ;;  %v1185_v15 = vmul.f32 %v1473_v14, %v1183_v58  ;;  %v1671_v4 = vld [vmem:[%s1986_s22 + $0x38] sm:$0xff]  ;;  %v1673_v62 = vld [vmem:[%s1986_s22 + $0x48] sm:$0xff]  ;;  %v1674_v49 = vld [vmem:[%s1986_s22 + $0x50] sm:$0xff] }
 0x410   : > { %v1675_v14 = vld [vmem:[%s1986_s22 + $0x58] sm:$0xff] }
 0x411   : > { %v1228_v30 = vrot.slane %v1221_v38, %v2291_v43  ;;  %v1259_v54 = vcombine.low %v1255_v6, %v1256_v10  ;;  %v1186_v28 = vadd.f32 %v1185_v15, %v1141_v31  ;;  %v1676_v38 = vld [vmem:[%s1986_s22 + $0x60] sm:$0xff]  ;;  %v1677_v10 = vld [vmem:[%s1986_s22 + $0x68] sm:$0xff]  ;;  %v1678_v15 = vld [vmem:[%s1986_s22 + $0x70] sm:$0xff] }
 0x413   : > { %v1230_v12 = vmul.f32 %v1476_v51, %v1228_v30  ;;  %v1266_v33 = vrot.slane %v1259_v54, %v2291_v43  ;;  %v1679_v54 = vld [vmem:[%s1986_s22 + $0x78] sm:$0xff] }
 0x415   : > { %v1273_v19 = vrot.slane %v1266_v33, %v2291_v43  ;;  %v1231_v17 = vadd.f32 %v1230_v12, %v1186_v28 }
 0x417   : > { %v1275_v5 = vmul.f32 %v1479_v34, %v1273_v19 }
 0x419   : > { %v1276_v20 = vadd.f32 %v1275_v5, %v1231_v17 }
 0x41b   : > { %v1277_v63 = vsub.f32 0.0, %v1276_v20 }
 0x41d   : > { %v1278_v21 = vmul.f32 1.442695, %v1277_v63 }
 0x41f   : > { %1660 = vpow2.f32 %v1278_v21 }
 0x429   : > { %v1661_v27 = vpop.eup %1660 }
 0x42a   : > { %v1280_v45 = vadd.f32 1.0, %v1661_v27 }
 0x42c   : > { %1662 = vrcp.f32 %v1280_v45 }
 0x436   : > { %v1663_v29 = vpop.eup %1662 }
 0x437   : > { %v1286_v35 = vrot.slane %v1663_v29, %v781_v40  ;;  %v1290_v36 = vrot.slane %v1663_v29, %v1289_v2 }
 0x439   : > { %v1293_v39 = vmul.f32 %v1286_v35, %v2162_v48  ;;  %v1294_v43 = vmul.f32 %v1290_v36, %v2165_v50  ;;  %v1295_v41 = vmul.f32 %v1286_v35, %v2156_v46  ;;  %v1296_v42 = vmul.f32 %v1290_v36, %v2159_v47 }
 0x43a   : > { %v1297_v44 = vmul.f32 %v1286_v35, %v2168_v53  ;;  %v1298_v52 = vmul.f32 %v1290_v36, %v2171_v56  ;;  %v1299_v55 = vmul.f32 %v1286_v35, %v2184_v1  ;;  %v1300_v40 = vmul.f32 %v1290_v36, %v2187_v59 }
 0x43b   : > { %v1301_v48 = vmul.f32 %v1286_v35, %v2190_v60  ;;  %v1302_v50 = vmul.f32 %v1290_v36, %v2193_v61  ;;  %v1303_v46 = vmul.f32 %v1286_v35, %v2200_v8  ;;  %v1304_v47 = vmul.f32 %v1290_v36, %v2203_v11  ;;  %v1664_v60 = vld [vmem:[%s1986_s22] sm:$0xff] }
 0x43c   : > { %v1305_v53 = vmul.f32 %v1286_v35, %v2212_v13  ;;  %v1306_v56 = vmul.f32 %v1290_v36, %v2215_v16  ;;  %v1307_v1 = vmul.f32 %v1286_v35, %v2222_v24  ;;  %v1308_v59 = vmul.f32 %v1290_v36, %v2225_v25  ;;  %v1668_v16 = vld [vmem:[%s1986_s22 + $0x20] sm:$0xff]  ;;  %v1669_v25 = vld [vmem:[%s1986_s22 + $0x28] sm:$0xff]  ;;  %s1725_s22 = scalar_lea.vmem %s2557_s12, 2048 }
 0x43d   : > { %v1309_v61 = vadd.f32 %v1664_v60, %v1293_v39  ;;  %v1310_v8 = vadd.f32 %v1665_v32, %v1294_v43  ;;  %v1311_v11 = vadd.f32 %v1666_v9, %v1295_v41  ;;  %v1312_v13 = vadd.f32 %v1667_v18, %v1296_v42  ;;  %p1726_p5 = scmp.ne.s32.totalorder %s2557_s12, %s1725_s22  ;;  %p1733_p1 = scmp.lt.s32.totalorder %s1731_s18, %s1725_s22 }
 0x43e   : > { %v1313_v24 = vadd.f32 %v1668_v16, %v1297_v44  ;;  %v1314_v23 = vadd.f32 %v1669_v25, %v1298_v52  ;;  %v1315_v57 = vadd.f32 %v1670_v26, %v1299_v55  ;;  %v1316_v0 = vadd.f32 %v1671_v4, %v1300_v40 }
 0x43f   : > { %v1317_v58 = vadd.f32 %v1672_v22, %v1301_v48  ;;  %v1318_v3 = vadd.f32 %v1673_v62, %v1302_v50  ;;  %v1319_v7 = vadd.f32 %v1674_v49, %v1303_v46  ;;  %v1320_v37 = vadd.f32 %v1675_v14, %v1304_v47  ;;  %1325 = vst [vmem:[%s2525_s17] sm:$0xff] %v1309_v61  ;;  %p1727_p8 = pnand %p1726_p5, %p2630_p12  ;;  %p1734_p4 = por %p1733_p1, %p1732_p10 }
 0x440   : > { %1326 = vst [vmem:[%s2525_s17 + $0x8] sm:$0xff] %v1310_v8  ;;  %1327 = vst [vmem:[%s2525_s17 + $0x10] sm:$0xff] %v1311_v11  ;;  %v1321_v6 = vadd.f32 %v1676_v38, %v1305_v53  ;;  %v1322_v51 = vadd.f32 %v1677_v10, %v1306_v56  ;;  %v1323_v30 = vadd.f32 %v1678_v15, %v1307_v1 }
 0x441   : > { %1328 = vst [vmem:[%s2525_s17 + $0x18] sm:$0xff] %v1312_v13  ;;  %v1324_v31 = vadd.f32 %v1679_v54, %v1308_v59  ;;  %1329 = vst [vmem:[%s2525_s17 + $0x20] sm:$0xff] %v1313_v24  ;;  %p1728_p9 = pneg %p1727_p8 }
 0x442   : > { %1330 = vst [vmem:[%s2525_s17 + $0x28] sm:$0xff] %v1314_v23  ;;  %1331 = vst [vmem:[%s2525_s17 + $0x30] sm:$0xff] %v1315_v57 }
 0x443   : > { %1332 = vst [vmem:[%s2525_s17 + $0x38] sm:$0xff] %v1316_v0  ;;  %1333 = vst [vmem:[%s2525_s17 + $0x40] sm:$0xff] %v1317_v58  ;;  %p1735_p11 = pnand %p1734_p4, %p1728_p9 }
 0x444   : > { %1334 = vst [vmem:[%s2525_s17 + $0x48] sm:$0xff] %v1318_v3  ;;  %1335 = vst [vmem:[%s2525_s17 + $0x50] sm:$0xff] %v1319_v7 }
 0x445   : > { %1336 = vst [vmem:[%s2525_s17 + $0x58] sm:$0xff] %v1320_v37  ;;  %1337 = vst [vmem:[%s2525_s17 + $0x60] sm:$0xff] %v1321_v6 }
 0x446   : > { %1338 = vst [vmem:[%s2525_s17 + $0x68] sm:$0xff] %v1322_v51  ;;  %1339 = vst [vmem:[%s2525_s17 + $0x70] sm:$0xff] %v1323_v30 }
 0x447   : > { %1340 = vst [vmem:[%s2525_s17 + $0x78] sm:$0xff] %v1324_v31 }
 0x448   : > { %1738 = shalt.err (!%p1735_p11)
}
 0x449   : > { %s1739_s21 = scalar_lea.hbm %s2545_s15, 2048  ;;  %s1743_s27 = scalar_lea.hbm %s2616_s6, 4096 }
 0x44a   : > { %p1740_p0 = scmp.ne.s32.totalorder %s2545_s15, %s1739_s21  ;;  %p1744_p6 = scmp.lt.u32.totalorder %s2545_s15, %s2616_s6 }
 0x44b   : > { %p1745_p3 = scmp.lt.u32.totalorder %s1743_s27, %s1739_s21  ;;  %p1747_p5 = scmp.lt.u32.totalorder %s1739_s21, %s2545_s15 }
 0x44c   : > { %p1741_p2 = pnand %p1740_p0, %p2630_p12 }
 0x44d   : > { %p1746_p13 = por %p1745_p3, %p1744_p6 }
 0x44e   : > { %p1742_p7 = pneg %p1741_p2 }
 0x44f   : > { %p1748_p8 = por %p1747_p5, %p1746_p13 }
 0x451   : > { %p1749_p9 = pnand %p1748_p8, %p1742_p7 }
 0x453   : > { %1752 = shalt.err (!%p1749_p9)
}
 0x454   : > { %s1814_s20 = smov 256  }
 0x455   : > { %1590 = dma.vmem_to_hbm [thread:$0]  (%p2630_p12), %s2557_s12, 2048, %s2545_s15, %s1342_s5, %s1814_s20, %s1814_s20, %s1805_s30  }
 0x456 PF: > { %s1370_s8 = sand.u32 1, %s1783_s23   ;;  %p2631_p10 = scmp.ne.s32.totalorder %s2623_s11, 0 }
 0x457   : > { %p2632_p1 = scmp.ge.s32.totalorder %s1795_s26, 2  ;;  %s1371_s22 = scalar_lea.sflag [#allocation5], %s1370_s8 }
 0x459   : > { %p1601_p4 = pnand %p2632_p1, %p2631_p10 }
 0x45b   : > { %1778 = dma.done.wait (!%p1601_p4), %s1371_s22, 2048  }
 0x45c   : > { %1780 = vsyncadd (!%p1601_p4), %s1371_s22, 4294965248  ;;  %p21_p11 = scmp.ge.s32.totalorder %s1878_s28, 4   ;;  %s2633_s23 = smov %s1787_s24 }
 0x45d   : > { %s2634_s24 = smov %s1791_s25  ;;  %s2635_s25 = smov %s1890_s7 }
 0x45e   : > { %s2636_s26 = smov %s1878_s28  ;;  %23 = sbr.rel (!%p21_p11) target bundleno = 8 (0x8), region = 102 }
 0x465   :  { %1376 = vsyncpa [#allocation4], 1 }
 0x466   :  { %1378 = vsyncpa [#allocation4 + $0x1], 1 }
 0x467   :  { %1379 = vsyncpa [#allocation5], 1 }
 0x468   :  { %1381 = vsyncpa [#allocation5 + $0x1], 1 }
 0x469   :  { %1382 = vsyncpa [#allocation6], 1 }
 0x46a   :  { %1384 = vsyncpa [#allocation6 + $0x1], 1 }

</bundles_post_ra>
